<compile_context>
chip_gen: v5e
topology: v5e:2x2
jax: 0.10.0
libtpu: 0.0.40
codegen_flags: <defaults>
</compile_context>

<pallas_src>
import math

import jax
import jax.numpy as jnp
from jax import lax
from jax.experimental import pallas as pl
from jax.experimental.pallas import tpu as pltpu


NEG_SLOPE = 0.2  # LeakyReLU slope of the Pumarola discriminator body.


# ---------------------------------------------------------------------------
# Helpers: VMEM budget & tile selection
# ---------------------------------------------------------------------------
def _vmem_budget_bytes():
    """~70% of physical VMEM (v5e/v6e: 128 MiB, v7x: 64 MiB), capped at 96 MiB."""
    try:
        cap = int(pltpu.get_tpu_info().vmem_capacity_bytes)
    except Exception:
        cap = 64 * 1024 * 1024            # conservative (v7x-sized) fallback
    return max(32 * 1024 * 1024, min(int(cap * 0.7), 96 * 1024 * 1024))


def _pick_tile(dim, cap, align):
    """Largest tile <= cap that divides dim and is a multiple of `align`
    (or the full dim when dim <= cap / no aligned divisor exists)."""
    if dim <= cap:
        return dim
    t = (cap // align) * align
    while t >= align:
        if dim % t == 0:
            return t
        t -= align
    return dim


# ---------------------------------------------------------------------------
# Patch extraction (XLA wrapper side): pad + H/W space-to-depth + 4 tap slices
# ---------------------------------------------------------------------------
def _space_to_depth_patches(x):
    """(N,H,W,C) -> ((N*Ho*Wo, 16*C) patch matrix, Ho, Wo) for conv(k=4,s=2,p=1).

    Patch-column order is (dh, dw, qh, qw, ci) with kh = 2*dh + qh and
    kw = 2*dw + qw; `_reorder_conv_weight` produces the matching weight rows.
    """
    n, h, w, c = x.shape
    assert h % 2 == 0 and w % 2 == 0, (h, w)   # stride-2 conv halves exactly
    ho, wo = h // 2, w // 2
    xp = jnp.pad(x, ((0, 0), (1, 1), (1, 1), (0, 0)))          # (N,2Ho+2,2Wo+2,C)
    z = xp.reshape(n, ho + 1, 2, wo + 1, 2, c)                 # (n,h',qh,w',qw,c)
    z = jnp.transpose(z, (0, 1, 3, 2, 4, 5)).reshape(n, ho + 1, wo + 1, 4 * c)
    taps = [z[:, dh:dh + ho, dw:dw + wo, :]                    # (dh, dw) taps
            for dh in (0, 1) for dw in (0, 1)]
    patches = jnp.concatenate(taps, axis=-1)                   # (N,Ho,Wo,16C)
    return patches.reshape(n * ho * wo, 16 * c), ho, wo


def _reorder_conv_weight(w_hwio):
    """(4,4,Cin,Cout) HWIO -> (16*Cin, Cout) matching `_space_to_depth_patches`."""
    _, _, cin, cout = w_hwio.shape
    w6 = w_hwio.reshape(2, 2, 2, 2, cin, cout)       # (dh, qh, dw, qw, ci, co)
    w6 = jnp.transpose(w6, (0, 2, 1, 3, 4, 5))       # (dh, dw, qh, qw, ci, co)
    return w6.reshape(16 * cin, cout)


# ---------------------------------------------------------------------------
# Pallas kernel 1: tiled matmul + bias + LeakyReLU (one conv layer)
# ---------------------------------------------------------------------------
def _mm_bias_lrelu_kernel(p_ref, w_ref, b_ref, o_ref, acc_ref):
    """One (M-tile, K-tile) step of  out = LeakyReLU(P @ W + b).

    p_ref : (tm, tk)   bf16 patch rows     w_ref  : (tk, Cout) bf16
    b_ref : (1, Cout)  f32                 o_ref  : (tm, Cout) out dtype
    acc_ref: (tm, Cout) f32 scratch accumulator (lives across the K axis)
    """
    @pl.when(pl.program_id(1) == 0)
    def _init():
        acc_ref[...] = jnp.zeros_like(acc_ref)

    acc_ref[...] += jnp.dot(p_ref[...], w_ref[...],
                            preferred_element_type=jnp.float32)

    @pl.when(pl.program_id(1) == pl.num_programs(1) - 1)
    def _finalize():
        acc = acc_ref[...] + b_ref[...]                   # bias once per tile
        acc = jnp.where(acc >= 0, acc, NEG_SLOPE * acc)   # LeakyReLU in f32
        o_ref[...] = acc.astype(o_ref.dtype)              # single dense store


def _matmul_bias_lrelu(p2, w_mat, bias, *, out_dtype, tm_cap=512, tk_cap=2048):
    m, k = p2.shape
    cout = w_mat.shape[1]
    tm = _pick_tile(m, tm_cap, 8)
    tk = _pick_tile(k, tk_cap, 128)
    grid = (m // tm, k // tk)

    flops = 2 * m * k * cout
    bytes_accessed = (int(p2.size) * p2.dtype.itemsize
                      + int(w_mat.size) * w_mat.dtype.itemsize   # counted once
                      + int(bias.size) * bias.dtype.itemsize
                      + m * cout * jnp.dtype(out_dtype).itemsize)

    return pl.pallas_call(
        _mm_bias_lrelu_kernel,
        out_shape=jax.ShapeDtypeStruct((m, cout), out_dtype),
        grid=grid,
        in_specs=[
            pl.BlockSpec((tm, tk), lambda i, kk: (i, kk)),
            pl.BlockSpec((tk, cout), lambda i, kk: (kk, 0)),
            pl.BlockSpec((1, cout), lambda i, kk: (0, 0)),
        ],
        out_specs=pl.BlockSpec((tm, cout), lambda i, kk: (i, 0)),
        scratch_shapes=[pltpu.VMEM((tm, cout), jnp.float32)],
        compiler_params=pltpu.CompilerParams(
            dimension_semantics=("parallel", "arbitrary"),
            vmem_limit_bytes=_vmem_budget_bytes()),
        cost_estimate=pl.CostEstimate(flops=flops, transcendentals=0,
                                      bytes_accessed=bytes_accessed),
    )(p2, w_mat, bias)


def conv_layer_pallas(x, w_mat, bias):
    """x: (N,H,W,Cin) bf16 NHWC.  w_mat: (16*Cin, Cout) bf16.  bias: (1,Cout) f32."""
    n = x.shape[0]
    cout = w_mat.shape[1]
    p2, ho, wo = _space_to_depth_patches(x)
    y = _matmul_bias_lrelu(p2, w_mat, bias, out_dtype=x.dtype)
    return y.reshape(n, ho, wo, cout)


# ---------------------------------------------------------------------------
# Pallas kernel 2: final 1x1-spatial layer fused with the two 1x1 heads
# ---------------------------------------------------------------------------
def _final_layer_heads_kernel(p_ref, w_ref, b_ref, wh_ref, o_ref):
    """feat = LeakyReLU(P @ W + b);  out = feat @ W_heads (block-diag heads)."""
    feat = jnp.dot(p_ref[...], w_ref[...], preferred_element_type=jnp.float32)
    feat = feat + b_ref[...]
    feat = jnp.where(feat >= 0, feat, NEG_SLOPE * feat)      # f32 epilogue
    o_ref[...] = jnp.dot(feat, wh_ref[...], preferred_element_type=jnp.float32)


def _final_layer_and_heads(p2, w_mat, bias, w_heads):
    m, k = p2.shape
    cout = w_mat.shape[1]
    nh = w_heads.shape[1]
    flops = 2 * m * k * cout + 2 * m * cout * nh
    bytes_accessed = (int(p2.size) * 2 + int(w_mat.size) * 2
                      + int(bias.size) * 4 + int(w_heads.size) * 4 + m * nh * 4)
    # Whole arrays are VMEM-resident (no grid): tiny final layer + heads.
    return pl.pallas_call(
        _final_layer_heads_kernel,
        out_shape=jax.ShapeDtypeStruct((m, nh), jnp.float32),
        compiler_params=pltpu.CompilerParams(
            vmem_limit_bytes=_vmem_budget_bytes()),
        cost_estimate=pl.CostEstimate(flops=flops, transcendentals=0,
                                      bytes_accessed=bytes_accessed),
    )(p2, w_mat, bias, w_heads)


# ---------------------------------------------------------------------------
# Parameters: merged (reality ⊕ pose) body, He init
# ---------------------------------------------------------------------------
def build_merged_body_params(key, in_channels, image_size, initial_dim, max_dim):
    """Merged Conv2d(4, s=2, p=1) stack equivalent to two independent bodies.

    Layer 0 concatenates the two branch weights along Cout (identical input);
    deeper layers use block-diagonal merged weights, so one pass computes both
    bodies exactly.  Returns:
      kernel_params: [(w_mat bf16 (16*CinM, CoutM), bias f32 (1, CoutM)), ...]
      ref_params   : [(w_m   f32  (4, 4, CinM, CoutM), bias f32 (1, CoutM)), ...]
      out_dim      : per-branch output channel count
    """
    kernel_params, ref_params = [], []
    size = image_size
    cin_branch = in_channels
    cout_branch = initial_dim
    first = True
    while size > 1:
        key, kr, kp, kb = jax.random.split(key, 4)
        scale = math.sqrt(2.0 / (4 * 4 * cin_branch))
        w_r = jax.random.normal(kr, (4, 4, cin_branch, cout_branch), jnp.float32) * scale
        w_p = jax.random.normal(kp, (4, 4, cin_branch, cout_branch), jnp.float32) * scale
        if first:
            cin_m = cin_branch                              # shared input image
            w_m = jnp.concatenate([w_r, w_p], axis=-1)
        else:
            cin_m = 2 * cin_branch                          # block-diagonal
            w_m = jnp.zeros((4, 4, cin_m, 2 * cout_branch), jnp.float32)
            w_m = w_m.at[:, :, :cin_branch, :cout_branch].set(w_r)
            w_m = w_m.at[:, :, cin_branch:, cout_branch:].set(w_p)
        b_m = 0.1 * jax.random.normal(kb, (1, 2 * cout_branch), jnp.float32)
        w_mat = _reorder_conv_weight(w_m).astype(jnp.bfloat16)   # (16*CinM, CoutM)
        kernel_params.append((w_mat, b_m))
        ref_params.append((w_m, b_m))
        cin_branch = cout_branch
        cout_branch = min(cout_branch * 2, max_dim)
        first = False
        size //= 2
    return kernel_params, ref_params, cin_branch


# ---------------------------------------------------------------------------
# Forward pass
# ---------------------------------------------------------------------------
def simplified_pumarola_discriminator_separate(input_image, output_image,
                                               kernel_params, w_heads):
    """input/output_image: NCHW f32.  Returns (reality.squeeze(), pose.squeeze())."""
    x = jnp.concatenate([input_image, output_image], axis=1)       # NCHW concat
    x = jnp.transpose(x, (0, 2, 3, 1)).astype(jnp.bfloat16)        # NHWC bf16

    for w_mat, bias in kernel_params[:-1]:                         # merged body
        x = conv_layer_pallas(x, w_mat, bias)

    # Last body layer always reduces the feature map to 1x1 spatial; fuse it
    # with the two bias-free 1x1 heads (block-diagonal head matrix) into a
    # single Pallas call when the weights fit comfortably in VMEM.
    w_mat, bias = kernel_params[-1]
    n = x.shape[0]
    p2, ho, wo = _space_to_depth_patches(x)
    assert ho == 1 and wo == 1, (ho, wo)       # power-of-two image_size assumed
    fused_bytes = int(p2.size) * 2 + int(w_mat.size) * 2 + int(w_heads.size) * 4
    if fused_bytes <= 16 * 1024 * 1024:
        heads = _final_layer_and_heads(p2, w_mat, bias, w_heads)   # (N, 1+pose)
    else:
        # Very large final layer (real-scale max_dim): regular tiled Pallas
        # conv layer, then the tiny heads in XLA (as recommended in that case).
        feat = _matmul_bias_lrelu(p2, w_mat, bias, out_dtype=jnp.float32)
        heads = feat.reshape(n, -1) @ w_heads

    # torch .squeeze() semantics: (N,1)->(N,) (scalar if N==1); pose unchanged
    # for N>1, (pose,) if N==1.
    return jnp.squeeze(heads[:, :1]), jnp.squeeze(heads[:, 1:])


# ---------------------------------------------------------------------------
# Pure-XLA reference with the identical bf16 dataflow (for a correctness check)
# ---------------------------------------------------------------------------
def reference_forward(input_image, output_image, ref_params, w_reality, w_pose):
    x = jnp.concatenate([input_image, output_image], axis=1)
    x = jnp.transpose(x, (0, 2, 3, 1)).astype(jnp.bfloat16)
    y = None
    for w_m, bias in ref_params:
        y = lax.conv_general_dilated(
            x, w_m.astype(jnp.bfloat16), window_strides=(2, 2),
            padding=((1, 1), (1, 1)),
            dimension_numbers=("NHWC", "HWIO", "NHWC"),
            preferred_element_type=jnp.float32)
        y = y + bias.reshape(1, 1, 1, -1)
        y = jnp.where(y >= 0, y, NEG_SLOPE * y)
        x = y.astype(jnp.bfloat16)
    n = x.shape[0]
    feat = y.reshape(n, -1)                       # f32 final features, like the kernel
    out_dim = w_reality.shape[0]
    return (jnp.squeeze(feat[:, :out_dim] @ w_reality),
            jnp.squeeze(feat[:, out_dim:] @ w_pose))


# ---------------------------------------------------------------------------
if __name__ == "__main__":
    key = jax.random.PRNGKey(0)

    # Small shapes consistent with the module (scaled-down image_size).
    n, c_img, image_size = 2, 4, 16            # each image: 4 channels
    pose_size, initial_dim, max_dim = 12, 16, 64
    in_channels = 2 * c_img                     # concat of input & output images

    k_in, k_out, k_body, k_hr, k_hp = jax.random.split(key, 5)
    input_image = jax.random.normal(k_in, (n, c_img, image_size, image_size), jnp.float32)
    output_image = jax.random.normal(k_out, (n, c_img, image_size, image_size), jnp.float32)

    kernel_params, ref_params, out_dim = build_merged_body_params(
        k_body, in_channels, image_size, initial_dim, max_dim)
    w_reality = jax.random.normal(k_hr, (out_dim, 1), jnp.float32) * math.sqrt(2.0 / out_dim)
    w_pose = jax.random.normal(k_hp, (out_dim, pose_size), jnp.float32) * math.sqrt(2.0 / out_dim)

    # Block-diagonal merged head matrix: column 0 = reality head on the reality
    # half of the merged features, columns 1.. = pose head on the pose half.
    w_heads = jnp.zeros((2 * out_dim, 1 + pose_size), jnp.float32)
    w_heads = w_heads.at[:out_dim, :1].set(w_reality)
    w_heads = w_heads.at[out_dim:, 1:].set(w_pose)

    @jax.jit
    def fwd(inp, outp):
        return simplified_pumarola_discriminator_separate(
            inp, outp, kernel_params, w_heads)

    reality, pose = fwd(input_image, output_image)
    jax.block_until_ready((reality, pose))

    assert reality.shape == (n,), reality.shape
    assert pose.shape == (n, pose_size), pose.shape

    # Cross-check against an XLA conv reference with the same bf16 dataflow.
    ref_reality, ref_pose = reference_forward(
        input_image, output_image, ref_params, w_reality, w_pose)
    err_r = float(jnp.max(jnp.abs(reality - ref_reality)))
    err_p = float(jnp.max(jnp.abs(pose - ref_pose)))
    tol = 5e-2 * max(1.0,
                     float(jnp.max(jnp.abs(ref_reality))),
                     float(jnp.max(jnp.abs(ref_pose))))
    assert err_r <= tol and err_p <= tol, (err_r, err_p, tol)

    print("KERNEL_OK")
</pallas_src>

<mosaic_0001>
module attributes {stable_mosaic.version = 11 : i64} {
  func.func @_mm_bias_lrelu_kernel(%arg0: i32, %arg1: i32, %arg2: memref<128x128xbf16, #tpu.memory_space<vmem>>, %arg3: memref<128x32xbf16, #tpu.memory_space<vmem>>, %arg4: memref<1x32xf32, #tpu.memory_space<vmem>>, %arg5: memref<128x32xbf16, #tpu.memory_space<vmem>>, %arg6: memref<128x32xf32, #tpu.memory_space<vmem>>) attributes {dimension_semantics = [#tpu.dimension_semantics<parallel>, #tpu.dimension_semantics<arbitrary>], iteration_bounds = array<i64: 1, 1>, scalar_prefetch = 0 : i64, scratch_operands = 1 : i64, tpu.core_type = #tpu.core_type<tc>, window_params = [{transform_indices = @transform_0, window_bounds = array<i64: 128, 128>}, {transform_indices = @transform_1, window_bounds = array<i64: 128, 32>}, {pipeline_mode = #tpu.pipeline_mode<synchronous>, transform_indices = @transform_2, window_bounds = array<i64: 1, 32>}, {transform_indices = @transform_3, window_bounds = array<i64: 128, 32>}]} {
    %c0_i32 = arith.constant 0 : i32
    %0 = arith.cmpi eq, %arg1, %c0_i32 : i32
    %1 = arith.extui %0 : i1 to i32
    %c0_i32_0 = arith.constant 0 : i32
    %2 = arith.cmpi ne, %1, %c0_i32_0 : i32
    scf.if %2 {
      %cst_10 = arith.constant 0.000000e+00 : f32
      %12 = vector.broadcast %cst_10 : f32 to vector<128x32xf32>
      %c0_11 = arith.constant 0 : index
      %c0_12 = arith.constant 0 : index
      %13 = vector.load %arg6[%c0_11, %c0_12] : memref<128x32xf32, #tpu.memory_space<vmem>>, vector<128x32xf32>
      tpu.vector_store %arg6[%c0_11, %c0_12], %12 {strides = array<i32>} : memref<128x32xf32, #tpu.memory_space<vmem>>, vector<128x32xf32>,
    } else {
    }
    %c0 = arith.constant 0 : index
    %c0_1 = arith.constant 0 : index
    %3 = vector.load %arg6[%c0, %c0_1] : memref<128x32xf32, #tpu.memory_space<vmem>>, vector<128x32xf32>
    %c0_2 = arith.constant 0 : index
    %c0_3 = arith.constant 0 : index
    %4 = vector.load %arg2[%c0_2, %c0_3] : memref<128x128xbf16, #tpu.memory_space<vmem>>, vector<128x128xbf16>
    %c0_4 = arith.constant 0 : index
    %c0_5 = arith.constant 0 : index
    %5 = vector.load %arg3[%c0_4, %c0_5] : memref<128x32xbf16, #tpu.memory_space<vmem>>, vector<128x32xbf16>
    %cst = arith.constant dense<0.000000e+00> : vector<128x32xf32>
    %6 = tpu.matmul %4, %5, %cst {dimension_numbers = #tpu.dot_dimension_numbers<[1], [0], [0], [1], [0, 0, 1, 1], [], []>} : vector<128x128xbf16>, vector<128x32xbf16>, vector<128x32xf32> -> vector<128x32xf32>
    %7 = arith.addf %3, %6 : vector<128x32xf32>
    %c0_6 = arith.constant 0 : index
    %c0_7 = arith.constant 0 : index
    %8 = vector.load %arg6[%c0_6, %c0_7] : memref<128x32xf32, #tpu.memory_space<vmem>>, vector<128x32xf32>
    tpu.vector_store %arg6[%c0_6, %c0_7], %7 {strides = array<i32>} : memref<128x32xf32, #tpu.memory_space<vmem>>, vector<128x32xf32>,
    %c0_i32_8 = arith.constant 0 : i32
    %9 = arith.cmpi eq, %arg1, %c0_i32_8 : i32
    %10 = arith.extui %9 : i1 to i32
    %c0_i32_9 = arith.constant 0 : i32
    %11 = arith.cmpi ne, %10, %c0_i32_9 : i32
    scf.if %11 {
      %c0_10 = arith.constant 0 : index
      %c0_11 = arith.constant 0 : index
      %12 = vector.load %arg6[%c0_10, %c0_11] : memref<128x32xf32, #tpu.memory_space<vmem>>, vector<128x32xf32>
      %c0_12 = arith.constant 0 : index
      %c0_13 = arith.constant 0 : index
      %13 = vector.load %arg4[%c0_12, %c0_13] : memref<1x32xf32, #tpu.memory_space<vmem>>, vector<1x32xf32>
      %14 = vector.broadcast %13 : vector<1x32xf32> to vector<128x32xf32>
      %15 = arith.addf %12, %14 : vector<128x32xf32>
      %cst_14 = arith.constant 0.000000e+00 : f32
      %16 = vector.broadcast %cst_14 : f32 to vector<128x32xf32>
      %17 = arith.cmpf oge, %15, %16 : vector<128x32xf32>
      %cst_15 = arith.constant 2.000000e-01 : f32
      %18 = vector.broadcast %cst_15 : f32 to vector<128x32xf32>
      %19 = arith.mulf %18, %15 : vector<128x32xf32>
      %20 = arith.select %17, %15, %19 : vector<128x32xi1>, vector<128x32xf32>
      %21 = arith.truncf %20 : vector<128x32xf32> to vector<128x32xbf16>
      %c0_16 = arith.constant 0 : index
      %c0_17 = arith.constant 0 : index
      %22 = vector.load %arg5[%c0_16, %c0_17] : memref<128x32xbf16, #tpu.memory_space<vmem>>, vector<128x32xbf16>
      tpu.vector_store %arg5[%c0_16, %c0_17], %21 {strides = array<i32>} : memref<128x32xbf16, #tpu.memory_space<vmem>>, vector<128x32xbf16>,
    } else {
    }
    return
  }
  func.func @transform_0(%arg0: i32, %arg1: i32) -> (i32, i32) {
    %c0_i32 = arith.constant 0 : i32
    return %arg0, %arg1 : i32, i32
  }
  func.func @transform_1(%arg0: i32, %arg1: i32) -> (i32, i32) {
    %c0_i32 = arith.constant 0 : i32
    %c0_i32_0 = arith.constant 0 : i32
    return %arg1, %c0_i32 : i32, i32
  }
  func.func @transform_2(%arg0: i32, %arg1: i32) -> (i32, i32) {
    %c0_i32 = arith.constant 0 : i32
    %c0_i32_0 = arith.constant 0 : i32
    %c0_i32_1 = arith.constant 0 : i32
    return %c0_i32, %c0_i32_0 : i32, i32
  }
  func.func @transform_3(%arg0: i32, %arg1: i32) -> (i32, i32) {
    %c0_i32 = arith.constant 0 : i32
    %c0_i32_0 = arith.constant 0 : i32
    return %arg0, %c0_i32 : i32, i32
  }
}

module attributes {stable_mosaic.version = 11 : i64} {
  func.func @_mm_bias_lrelu_kernel(%arg0: i32, %arg1: i32, %arg2: memref<32x512xbf16, #tpu.memory_space<vmem>>, %arg3: memref<512x64xbf16, #tpu.memory_space<vmem>>, %arg4: memref<1x64xf32, #tpu.memory_space<vmem>>, %arg5: memref<32x64xbf16, #tpu.memory_space<vmem>>, %arg6: memref<32x64xf32, #tpu.memory_space<vmem>>) attributes {dimension_semantics = [#tpu.dimension_semantics<parallel>, #tpu.dimension_semantics<arbitrary>], iteration_bounds = array<i64: 1, 1>, scalar_prefetch = 0 : i64, scratch_operands = 1 : i64, tpu.core_type = #tpu.core_type<tc>, window_params = [{transform_indices = @transform_0, window_bounds = array<i64: 32, 512>}, {transform_indices = @transform_1, window_bounds = array<i64: 512, 64>}, {pipeline_mode = #tpu.pipeline_mode<synchronous>, transform_indices = @transform_2, window_bounds = array<i64: 1, 64>}, {transform_indices = @transform_3, window_bounds = array<i64: 32, 64>}]} {
    %c0_i32 = arith.constant 0 : i32
    %0 = arith.cmpi eq, %arg1, %c0_i32 : i32
    %1 = arith.extui %0 : i1 to i32
    %c0_i32_0 = arith.constant 0 : i32
    %2 = arith.cmpi ne, %1, %c0_i32_0 : i32
    scf.if %2 {
      %cst_10 = arith.constant 0.000000e+00 : f32
      %12 = vector.broadcast %cst_10 : f32 to vector<32x64xf32>
      %c0_11 = arith.constant 0 : index
      %c0_12 = arith.constant 0 : index
      %13 = vector.load %arg6[%c0_11, %c0_12] : memref<32x64xf32, #tpu.memory_space<vmem>>, vector<32x64xf32>
      tpu.vector_store %arg6[%c0_11, %c0_12], %12 {strides = array<i32>} : memref<32x64xf32, #tpu.memory_space<vmem>>, vector<32x64xf32>,
    } else {
    }
    %c0 = arith.constant 0 : index
    %c0_1 = arith.constant 0 : index
    %3 = vector.load %arg6[%c0, %c0_1] : memref<32x64xf32, #tpu.memory_space<vmem>>, vector<32x64xf32>
    %c0_2 = arith.constant 0 : index
    %c0_3 = arith.constant 0 : index
    %4 = vector.load %arg2[%c0_2, %c0_3] : memref<32x512xbf16, #tpu.memory_space<vmem>>, vector<32x512xbf16>
    %c0_4 = arith.constant 0 : index
    %c0_5 = arith.constant 0 : index
    %5 = vector.load %arg3[%c0_4, %c0_5] : memref<512x64xbf16, #tpu.memory_space<vmem>>, vector<512x64xbf16>
    %cst = arith.constant dense<0.000000e+00> : vector<32x64xf32>
    %6 = tpu.matmul %4, %5, %cst {dimension_numbers = #tpu.dot_dimension_numbers<[1], [0], [0], [1], [0, 0, 1, 1], [], []>} : vector<32x512xbf16>, vector<512x64xbf16>, vector<32x64xf32> -> vector<32x64xf32>
    %7 = arith.addf %3, %6 : vector<32x64xf32>
    %c0_6 = arith.constant 0 : index
    %c0_7 = arith.constant 0 : index
    %8 = vector.load %arg6[%c0_6, %c0_7] : memref<32x64xf32, #tpu.memory_space<vmem>>, vector<32x64xf32>
    tpu.vector_store %arg6[%c0_6, %c0_7], %7 {strides = array<i32>} : memref<32x64xf32, #tpu.memory_space<vmem>>, vector<32x64xf32>,
    %c0_i32_8 = arith.constant 0 : i32
    %9 = arith.cmpi eq, %arg1, %c0_i32_8 : i32
    %10 = arith.extui %9 : i1 to i32
    %c0_i32_9 = arith.constant 0 : i32
    %11 = arith.cmpi ne, %10, %c0_i32_9 : i32
    scf.if %11 {
      %c0_10 = arith.constant 0 : index
      %c0_11 = arith.constant 0 : index
      %12 = vector.load %arg6[%c0_10, %c0_11] : memref<32x64xf32, #tpu.memory_space<vmem>>, vector<32x64xf32>
      %c0_12 = arith.constant 0 : index
      %c0_13 = arith.constant 0 : index
      %13 = vector.load %arg4[%c0_12, %c0_13] : memref<1x64xf32, #tpu.memory_space<vmem>>, vector<1x64xf32>
      %14 = vector.broadcast %13 : vector<1x64xf32> to vector<32x64xf32>
      %15 = arith.addf %12, %14 : vector<32x64xf32>
      %cst_14 = arith.constant 0.000000e+00 : f32
      %16 = vector.broadcast %cst_14 : f32 to vector<32x64xf32>
      %17 = arith.cmpf oge, %15, %16 : vector<32x64xf32>
      %cst_15 = arith.constant 2.000000e-01 : f32
      %18 = vector.broadcast %cst_15 : f32 to vector<32x64xf32>
      %19 = arith.mulf %18, %15 : vector<32x64xf32>
      %20 = arith.select %17, %15, %19 : vector<32x64xi1>, vector<32x64xf32>
      %21 = arith.truncf %20 : vector<32x64xf32> to vector<32x64xbf16>
      %c0_16 = arith.constant 0 : index
      %c0_17 = arith.constant 0 : index
      %22 = vector.load %arg5[%c0_16, %c0_17] : memref<32x64xbf16, #tpu.memory_space<vmem>>, vector<32x64xbf16>
      tpu.vector_store %arg5[%c0_16, %c0_17], %21 {strides = array<i32>} : memref<32x64xbf16, #tpu.memory_space<vmem>>, vector<32x64xbf16>,
    } else {
    }
    return
  }
  func.func @transform_0(%arg0: i32, %arg1: i32) -> (i32, i32) {
    %c0_i32 = arith.constant 0 : i32
    return %arg0, %arg1 : i32, i32
  }
  func.func @transform_1(%arg0: i32, %arg1: i32) -> (i32, i32) {
    %c0_i32 = arith.constant 0 : i32
    %c0_i32_0 = arith.constant 0 : i32
    return %arg1, %c0_i32 : i32, i32
  }
  func.func @transform_2(%arg0: i32, %arg1: i32) -> (i32, i32) {
    %c0_i32 = arith.constant 0 : i32
    %c0_i32_0 = arith.constant 0 : i32
    %c0_i32_1 = arith.constant 0 : i32
    return %c0_i32, %c0_i32_0 : i32, i32
  }
  func.func @transform_3(%arg0: i32, %arg1: i32) -> (i32, i32) {
    %c0_i32 = arith.constant 0 : i32
    %c0_i32_0 = arith.constant 0 : i32
    return %arg0, %c0_i32 : i32, i32
  }
}

module attributes {stable_mosaic.version = 11 : i64} {
  func.func @_mm_bias_lrelu_kernel(%arg0: i32, %arg1: i32, %arg2: memref<8x1024xbf16, #tpu.memory_space<vmem>>, %arg3: memref<1024x128xbf16, #tpu.memory_space<vmem>>, %arg4: memref<1x128xf32, #tpu.memory_space<vmem>>, %arg5: memref<8x128xbf16, #tpu.memory_space<vmem>>, %arg6: memref<8x128xf32, #tpu.memory_space<vmem>>) attributes {dimension_semantics = [#tpu.dimension_semantics<parallel>, #tpu.dimension_semantics<arbitrary>], iteration_bounds = array<i64: 1, 1>, scalar_prefetch = 0 : i64, scratch_operands = 1 : i64, tpu.core_type = #tpu.core_type<tc>, window_params = [{transform_indices = @transform_0, window_bounds = array<i64: 8, 1024>}, {transform_indices = @transform_1, window_bounds = array<i64: 1024, 128>}, {pipeline_mode = #tpu.pipeline_mode<synchronous>, transform_indices = @transform_2, window_bounds = array<i64: 1, 128>}, {transform_indices = @transform_3, window_bounds = array<i64: 8, 128>}]} {
    %c0_i32 = arith.constant 0 : i32
    %0 = arith.cmpi eq, %arg1, %c0_i32 : i32
    %1 = arith.extui %0 : i1 to i32
    %c0_i32_0 = arith.constant 0 : i32
    %2 = arith.cmpi ne, %1, %c0_i32_0 : i32
    scf.if %2 {
      %cst_10 = arith.constant 0.000000e+00 : f32
      %12 = vector.broadcast %cst_10 : f32 to vector<8x128xf32>
      %c0_11 = arith.constant 0 : index
      %c0_12 = arith.constant 0 : index
      %13 = vector.load %arg6[%c0_11, %c0_12] : memref<8x128xf32, #tpu.memory_space<vmem>>, vector<8x128xf32>
      tpu.vector_store %arg6[%c0_11, %c0_12], %12 {strides = array<i32>} : memref<8x128xf32, #tpu.memory_space<vmem>>, vector<8x128xf32>,
    } else {
    }
    %c0 = arith.constant 0 : index
    %c0_1 = arith.constant 0 : index
    %3 = vector.load %arg6[%c0, %c0_1] : memref<8x128xf32, #tpu.memory_space<vmem>>, vector<8x128xf32>
    %c0_2 = arith.constant 0 : index
    %c0_3 = arith.constant 0 : index
    %4 = vector.load %arg2[%c0_2, %c0_3] : memref<8x1024xbf16, #tpu.memory_space<vmem>>, vector<8x1024xbf16>
    %c0_4 = arith.constant 0 : index
    %c0_5 = arith.constant 0 : index
    %5 = vector.load %arg3[%c0_4, %c0_5] : memref<1024x128xbf16, #tpu.memory_space<vmem>>, vector<1024x128xbf16>
    %cst = arith.constant dense<0.000000e+00> : vector<8x128xf32>
    %6 = tpu.matmul %4, %5, %cst {dimension_numbers = #tpu.dot_dimension_numbers<[1], [0], [0], [1], [0, 0, 1, 1], [], []>} : vector<8x1024xbf16>, vector<1024x128xbf16>, vector<8x128xf32> -> vector<8x128xf32>
    %7 = arith.addf %3, %6 : vector<8x128xf32>
    %c0_6 = arith.constant 0 : index
    %c0_7 = arith.constant 0 : index
    %8 = vector.load %arg6[%c0_6, %c0_7] : memref<8x128xf32, #tpu.memory_space<vmem>>, vector<8x128xf32>
    tpu.vector_store %arg6[%c0_6, %c0_7], %7 {strides = array<i32>} : memref<8x128xf32, #tpu.memory_space<vmem>>, vector<8x128xf32>,
    %c0_i32_8 = arith.constant 0 : i32
    %9 = arith.cmpi eq, %arg1, %c0_i32_8 : i32
    %10 = arith.extui %9 : i1 to i32
    %c0_i32_9 = arith.constant 0 : i32
    %11 = arith.cmpi ne, %10, %c0_i32_9 : i32
    scf.if %11 {
      %c0_10 = arith.constant 0 : index
      %c0_11 = arith.constant 0 : index
      %12 = vector.load %arg6[%c0_10, %c0_11] : memref<8x128xf32, #tpu.memory_space<vmem>>, vector<8x128xf32>
      %c0_12 = arith.constant 0 : index
      %c0_13 = arith.constant 0 : index
      %13 = vector.load %arg4[%c0_12, %c0_13] : memref<1x128xf32, #tpu.memory_space<vmem>>, vector<1x128xf32>
      %14 = vector.broadcast %13 : vector<1x128xf32> to vector<8x128xf32>
      %15 = arith.addf %12, %14 : vector<8x128xf32>
      %cst_14 = arith.constant 0.000000e+00 : f32
      %16 = vector.broadcast %cst_14 : f32 to vector<8x128xf32>
      %17 = arith.cmpf oge, %15, %16 : vector<8x128xf32>
      %cst_15 = arith.constant 2.000000e-01 : f32
      %18 = vector.broadcast %cst_15 : f32 to vector<8x128xf32>
      %19 = arith.mulf %18, %15 : vector<8x128xf32>
      %20 = arith.select %17, %15, %19 : vector<8x128xi1>, vector<8x128xf32>
      %21 = arith.truncf %20 : vector<8x128xf32> to vector<8x128xbf16>
      %c0_16 = arith.constant 0 : index
      %c0_17 = arith.constant 0 : index
      %22 = vector.load %arg5[%c0_16, %c0_17] : memref<8x128xbf16, #tpu.memory_space<vmem>>, vector<8x128xbf16>
      tpu.vector_store %arg5[%c0_16, %c0_17], %21 {strides = array<i32>} : memref<8x128xbf16, #tpu.memory_space<vmem>>, vector<8x128xbf16>,
    } else {
    }
    return
  }
  func.func @transform_0(%arg0: i32, %arg1: i32) -> (i32, i32) {
    %c0_i32 = arith.constant 0 : i32
    return %arg0, %arg1 : i32, i32
  }
  func.func @transform_1(%arg0: i32, %arg1: i32) -> (i32, i32) {
    %c0_i32 = arith.constant 0 : i32
    %c0_i32_0 = arith.constant 0 : i32
    return %arg1, %c0_i32 : i32, i32
  }
  func.func @transform_2(%arg0: i32, %arg1: i32) -> (i32, i32) {
    %c0_i32 = arith.constant 0 : i32
    %c0_i32_0 = arith.constant 0 : i32
    %c0_i32_1 = arith.constant 0 : i32
    return %c0_i32, %c0_i32_0 : i32, i32
  }
  func.func @transform_3(%arg0: i32, %arg1: i32) -> (i32, i32) {
    %c0_i32 = arith.constant 0 : i32
    %c0_i32_0 = arith.constant 0 : i32
    return %arg0, %c0_i32 : i32, i32
  }
}

module attributes {stable_mosaic.version = 11 : i64} {
  func.func @_final_layer_heads_kernel(%arg0: memref<2x2048xbf16, #tpu.memory_space<vmem>>, %arg1: memref<2048x128xbf16, #tpu.memory_space<vmem>>, %arg2: memref<1x128xf32, #tpu.memory_space<vmem>>, %arg3: memref<128x13xf32, #tpu.memory_space<vmem>>, %arg4: memref<2x13xf32, #tpu.memory_space<vmem>>) attributes {dimension_semantics = [], scalar_prefetch = 0 : i64, scratch_operands = 0 : i64, tpu.core_type = #tpu.core_type<tc>} {
    %c0 = arith.constant 0 : index
    %c0_0 = arith.constant 0 : index
    %0 = vector.load %arg0[%c0, %c0_0] : memref<2x2048xbf16, #tpu.memory_space<vmem>>, vector<2x2048xbf16>
    %c0_1 = arith.constant 0 : index
    %c0_2 = arith.constant 0 : index
    %1 = vector.load %arg1[%c0_1, %c0_2] : memref<2048x128xbf16, #tpu.memory_space<vmem>>, vector<2048x128xbf16>
    %cst = arith.constant dense<0.000000e+00> : vector<2x128xf32>
    %2 = tpu.matmul %0, %1, %cst {dimension_numbers = #tpu.dot_dimension_numbers<[1], [0], [0], [1], [0, 0, 1, 1], [], []>} : vector<2x2048xbf16>, vector<2048x128xbf16>, vector<2x128xf32> -> vector<2x128xf32>
    %c0_3 = arith.constant 0 : index
    %c0_4 = arith.constant 0 : index
    %3 = vector.load %arg2[%c0_3, %c0_4] : memref<1x128xf32, #tpu.memory_space<vmem>>, vector<1x128xf32>
    %4 = vector.broadcast %3 : vector<1x128xf32> to vector<2x128xf32>
    %5 = arith.addf %2, %4 : vector<2x128xf32>
    %cst_5 = arith.constant 0.000000e+00 : f32
    %6 = vector.broadcast %cst_5 : f32 to vector<2x128xf32>
    %7 = arith.cmpf oge, %5, %6 : vector<2x128xf32>
    %cst_6 = arith.constant 2.000000e-01 : f32
    %8 = vector.broadcast %cst_6 : f32 to vector<2x128xf32>
    %9 = arith.mulf %8, %5 : vector<2x128xf32>
    %10 = arith.select %7, %5, %9 : vector<2x128xi1>, vector<2x128xf32>
    %c0_7 = arith.constant 0 : index
    %c0_8 = arith.constant 0 : index
    %11 = vector.load %arg3[%c0_7, %c0_8] : memref<128x13xf32, #tpu.memory_space<vmem>>, vector<128x13xf32>
    %cst_9 = arith.constant dense<0.000000e+00> : vector<2x13xf32>
    %12 = tpu.matmul %10, %11, %cst_9 {dimension_numbers = #tpu.dot_dimension_numbers<[1], [0], [0], [1], [0, 0, 1, 1], [], []>} : vector<2x128xf32>, vector<128x13xf32>, vector<2x13xf32> -> vector<2x13xf32>
    %c0_10 = arith.constant 0 : index
    %c0_11 = arith.constant 0 : index
    %13 = vector.load %arg4[%c0_10, %c0_11] : memref<2x13xf32, #tpu.memory_space<vmem>>, vector<2x13xf32>
    tpu.vector_store %arg4[%c0_10, %c0_11], %12 {strides = array<i32>} : memref<2x13xf32, #tpu.memory_space<vmem>>, vector<2x13xf32>,
    return
  }
}

</mosaic_0001>

<bundles_post_ra>
// kernel: fwd.4
= control target key start
LH: loop header
LB: loop body
LE: loop exit
PB: predicated region body
PF: predicated region fallthrough
CT: control target
= control target key end

     0   :  { %vm18_vm0 = vcmask 261120   ;;  %v491_v6 = vmov 0.0   ;;  %vm364_vm3 = vcmask 257024   ;;  %s677_s1 = inlined_call_operand.vmem [shape: bf16[128,32], index: 1, kind: input, shape index: {}]   ;;  %s678_s2 = inlined_call_operand.vmem [shape: f32[1,32], index: 2, kind: input, shape index: {}]   ;;  %s679_s0 = inlined_call_operand.vmem [shape: bf16[128,128], index: 0, kind: input, shape index: {}]   ;;  %s680_s3 = inlined_call_operand.vmem [shape: bf16[128,32], index: 3, kind: output, shape index: {}]  }
   0x1   :  { %v464_v0 = vld [vmem:[%s677_s1 + $0x38] sm:$0xff]  ;;  %v463_v1 = vld [vmem:[%s677_s1 + $0x30] sm:$0xff]  ;;  %v462_v2 = vld [vmem:[%s677_s1 + $0x28] sm:$0xff]  ;;  %19 = vst.msk [vmem:[#allocation2] sm:$0xff] %vm18_vm0, %v491_v6 }
   0x2   :  { %179 = vmatpush.bf16.msra.mxu0 %v464_v0  ;;  %465 = vmatpush.bf16.msra.mxu1 %v464_v0  ;;  %v461_v3 = vld [vmem:[%s677_s1 + $0x20] sm:$0xff]  ;;  %v460_v4 = vld [vmem:[%s677_s1 + $0x18] sm:$0xff]  ;;  %v459_v5 = vld [vmem:[%s677_s1 + $0x10] sm:$0xff]  ;;  %20 = vst.msk [vmem:[#allocation2 + $0x8] sm:$0xff] %vm18_vm0, %v491_v6 }
   0x3   :  { %466 = vmatpush.bf16.msra.mxu2 %v464_v0  ;;  %467 = vmatpush.bf16.msra.mxu3 %v464_v0  ;;  %21 = vst.msk [vmem:[#allocation2 + $0x10] sm:$0xff] %vm18_vm0, %v491_v6  ;;  %v458_v7 = vld [vmem:[%s677_s1 + $0x8] sm:$0xff]  ;;  %v457_v8 = vld [vmem:[%s677_s1] sm:$0xff]  ;;  %v451_v10 = vld [vmem:[%s679_s0 + $0x10] sm:$0xff] }
   0x4   :  { %22 = vst.msk [vmem:[#allocation2 + $0x18] sm:$0xff] %vm18_vm0, %v491_v6  ;;  %v449_v9 = vld [vmem:[%s679_s0] sm:$0xff]  ;;  %v455_v12 = vld [vmem:[%s679_s0 + $0x30] sm:$0xff]  ;;  %v450_v13 = vld [vmem:[%s679_s0 + $0x8] sm:$0xff] }
   0x5   :  { %23 = vst.msk [vmem:[#allocation2 + $0x20] sm:$0xff] %vm18_vm0, %v491_v6  ;;  %v453_v11 = vld [vmem:[%s679_s0 + $0x20] sm:$0xff]  ;;  %v452_v14 = vld [vmem:[%s679_s0 + $0x18] sm:$0xff]  ;;  %v454_v15 = vld [vmem:[%s679_s0 + $0x28] sm:$0xff] }
   0x6   :  { %180 = vmatpush.bf16.msra.mxu0 %v463_v1  ;;  %468 = vmatpush.bf16.msra.mxu1 %v463_v1  ;;  %24 = vst.msk [vmem:[#allocation2 + $0x28] sm:$0xff] %vm18_vm0, %v491_v6  ;;  %v456_v16 = vld [vmem:[%s679_s0 + $0x38] sm:$0xff]  ;;  %v581_v27 = vld [vmem:[%s678_s2] ss:$0 sm:$0xff] }
   0x7   :  { %469 = vmatpush.bf16.msra.mxu2 %v463_v1  ;;  %470 = vmatpush.bf16.msra.mxu3 %v463_v1  ;;  %25 = vst.msk [vmem:[#allocation2 + $0x30] sm:$0xff] %vm18_vm0, %v491_v6 }
   0x8   :  { %26 = vst.msk [vmem:[#allocation2 + $0x38] sm:$0xff] %vm18_vm0, %v491_v6  ;;  %v35_v17 = vld [vmem:[#allocation2] sm:$0xff] }
   0x9   :  { %27 = vst.msk [vmem:[#allocation2 + $0x40] sm:$0xff] %vm18_vm0, %v491_v6  ;;  %v36_v25 = vld [vmem:[#allocation2 + $0x8] sm:$0xff] }
   0xa   :  { %181 = vmatpush.bf16.msra.mxu0 %v462_v2  ;;  %471 = vmatpush.bf16.msra.mxu1 %v462_v2  ;;  %28 = vst.msk [vmem:[#allocation2 + $0x48] sm:$0xff] %vm18_vm0, %v491_v6  ;;  %v37_v47 = vld [vmem:[#allocation2 + $0x10] sm:$0xff] }
   0xb   :  { %472 = vmatpush.bf16.msra.mxu2 %v462_v2  ;;  %473 = vmatpush.bf16.msra.mxu3 %v462_v2  ;;  %29 = vst.msk [vmem:[#allocation2 + $0x50] sm:$0xff] %vm18_vm0, %v491_v6 }
   0xc   :  { %30 = vst.msk [vmem:[#allocation2 + $0x58] sm:$0xff] %vm18_vm0, %v491_v6  ;;  %v39_v18 = vld [vmem:[#allocation2 + $0x20] sm:$0xff] }
   0xd   :  { %31 = vst.msk [vmem:[#allocation2 + $0x60] sm:$0xff] %vm18_vm0, %v491_v6  ;;  %v40_v26 = vld [vmem:[#allocation2 + $0x28] sm:$0xff] }
   0xe   :  { %182 = vmatpush.bf16.msra.mxu0 %v461_v3  ;;  %474 = vmatpush.bf16.msra.mxu1 %v461_v3  ;;  %32 = vst.msk [vmem:[#allocation2 + $0x68] sm:$0xff] %vm18_vm0, %v491_v6  ;;  %v41_v52 = vld [vmem:[#allocation2 + $0x30] sm:$0xff] }
   0xf   :  { %475 = vmatpush.bf16.msra.mxu2 %v461_v3  ;;  %476 = vmatpush.bf16.msra.mxu3 %v461_v3  ;;  %33 = vst.msk [vmem:[#allocation2 + $0x70] sm:$0xff] %vm18_vm0, %v491_v6 }
  0x10   :  { %34 = vst.msk [vmem:[#allocation2 + $0x78] sm:$0xff] %vm18_vm0, %v491_v6  ;;  %v43_v23 = vld [vmem:[#allocation2 + $0x40] sm:$0xff] }
  0x11   :  { %v44_v41 = vld [vmem:[#allocation2 + $0x48] sm:$0xff] }
  0x12   :  { %183 = vmatpush.bf16.msra.mxu0 %v460_v4  ;;  %477 = vmatpush.bf16.msra.mxu1 %v460_v4  ;;  %v45_v6 = vld [vmem:[#allocation2 + $0x50] sm:$0xff] }
  0x13   :  { %478 = vmatpush.bf16.msra.mxu2 %v460_v4  ;;  %479 = vmatpush.bf16.msra.mxu3 %v460_v4 }
  0x14   :  { %v47_v24 = vld [vmem:[#allocation2 + $0x60] sm:$0xff] }
  0x15   :  { %v48_v43 = vld [vmem:[#allocation2 + $0x68] sm:$0xff] }
  0x16   :  { %184 = vmatpush.bf16.msra.mxu0 %v459_v5  ;;  %480 = vmatpush.bf16.msra.mxu1 %v459_v5 }
  0x17   :  { %481 = vmatpush.bf16.msra.mxu2 %v459_v5  ;;  %482 = vmatpush.bf16.msra.mxu3 %v459_v5 }
  0x1a   :  { %185 = vmatpush.bf16.msra.mxu0 %v458_v7  ;;  %483 = vmatpush.bf16.msra.mxu1 %v458_v7 }
  0x1b   :  { %484 = vmatpush.bf16.msra.mxu2 %v458_v7  ;;  %485 = vmatpush.bf16.msra.mxu3 %v458_v7 }
  0x1e   :  { %186 = vmatpush.bf16.msra.mxu0 %v457_v8  ;;  %486 = vmatpush.bf16.msra.mxu1 %v457_v8 }
  0x1f   :  { %487 = vmatpush.bf16.msra.mxu2 %v457_v8  ;;  %488 = vmatpush.bf16.msra.mxu3 %v457_v8 }
  0x21   :  { %187 = vmatmul.bf16.vlgmr.msra.gmra.mxu0 %v449_v9  ;;  %197 = vmatmul.bf16.vlgmr.msra.gmra.mxu1 %v451_v10 }
  0x22   :  { %207 = vmatmul.bf16.vlgmr.msra.gmra.mxu2 %v453_v11  ;;  %217 = vmatmul.bf16.vlgmr.msra.gmra.mxu3 %v455_v12  ;;  %v49_v11 = vld [vmem:[#allocation2 + $0x70] sm:$0xff] }
  0x31   :  { %192 = vmatmul.bf16.gmra.mxu0 %v450_v13  ;;  %202 = vmatmul.bf16.gmra.mxu1 %v452_v14 }
  0x32   :  { %212 = vmatmul.bf16.gmra.mxu2 %v454_v15  ;;  %222 = vmatmul.bf16.gmra.mxu3 %v456_v16  ;;  %v38_v15 = vld [vmem:[#allocation2 + $0x18] sm:$0xff] }
  0x9e   :  { %v188_v19 = vpop.f32.mrf.mxu0  ;;  %v198_v20 = vpop.f32.mrf.mxu1 }
  0x9f   :  { %v228_v21 = vadd.f32 %v188_v19, %v35_v17  ;;  %v232_v22 = vadd.f32 %v198_v20, %v39_v18  ;;  %v42_v20 = vld [vmem:[#allocation2 + $0x38] sm:$0xff] }
  0xa1   :  { %245 = vst.msk [vmem:[#allocation2] sm:$0xff] %vm18_vm0, %v228_v21 }
  0xa2   :  { %249 = vst.msk [vmem:[#allocation2 + $0x20] sm:$0xff] %vm18_vm0, %v232_v22 }
  0xa5   :  { %v208_v28 = vpop.f32.mrf.mxu2  ;;  %v218_v29 = vpop.f32.mrf.mxu3 }
  0xa6   :  { %v236_v30 = vadd.f32 %v208_v28, %v43_v23  ;;  %v240_v31 = vadd.f32 %v218_v29, %v47_v24  ;;  %v190_v32 = vpop.f32.mrf.mxu0  ;;  %v200_v33 = vpop.f32.mrf.mxu1 }
  0xa7   :  { %v229_v34 = vadd.f32 %v190_v32, %v36_v25  ;;  %v233_v35 = vadd.f32 %v200_v33, %v40_v26  ;;  %v46_v32 = vld [vmem:[#allocation2 + $0x58] sm:$0xff] }
  0xa8   :  { %v264_v36 = vld [vmem:[#allocation2] sm:$0xff]  ;;  %253 = vst.msk [vmem:[#allocation2 + $0x40] sm:$0xff] %vm18_vm0, %v236_v30 }
  0xa9   :  { %v284_v37 = vadd.f32 %v581_v27, %v264_v36  ;;  %v268_v38 = vld [vmem:[#allocation2 + $0x20] sm:$0xff]  ;;  %257 = vst.msk [vmem:[#allocation2 + $0x60] sm:$0xff] %vm18_vm0, %v240_v31 }
  0xaa   :  { %v288_v39 = vadd.f32 %v581_v27, %v268_v38  ;;  %246 = vst.msk [vmem:[#allocation2 + $0x8] sm:$0xff] %vm18_vm0, %v229_v34 }
  0xab   :  { %vm300_vm1 = vcmp.ge.f32.partialorder %v284_v37, 0.0  ;;  %v316_v40 = vmul.f32 0.2, %v284_v37  ;;  %250 = vst.msk [vmem:[#allocation2 + $0x28] sm:$0xff] %vm18_vm0, %v233_v35 }
  0xac   :  { %vm304_vm2 = vcmp.ge.f32.partialorder %v288_v39, 0.0  ;;  %v320_v42 = vmul.f32 0.2, %v288_v39 }
  0xad   :  { %v332_v44 = vsel %vm300_vm1, %v284_v37, %v316_v40  ;;  %v210_v45 = vpop.f32.mrf.mxu2  ;;  %v220_v46 = vpop.f32.mrf.mxu3 }
  0xae   :  { %v348_v48 = vpack.c.bf16 %v332_v44, %v332_v44  ;;  %v336_v49 = vsel %vm304_vm2, %v288_v39, %v320_v42  ;;  %v237_v50 = vadd.f32 %v210_v45, %v44_v41  ;;  %v193_v51 = vpop.f32.mrf.mxu0  ;;  %v203_v53 = vpop.f32.mrf.mxu1  ;;  %v241_v56 = vadd.f32 %v220_v46, %v48_v43  ;;  %v50_v42 = vld [vmem:[#allocation2 + $0x78] sm:$0xff] }
  0xaf   :  { %v352_v54 = vpack.c.bf16 %v336_v49, %v336_v49  ;;  %v272_v55 = vld [vmem:[#allocation2 + $0x40] sm:$0xff]  ;;  %v230_v59 = vadd.f32 %v193_v51, %v37_v47  ;;  %v234_v62 = vadd.f32 %v203_v53, %v41_v52 }
  0xb0   :  { %365 = vst.msk [vmem:[%s680_s3] sm:$0xf] %vm364_vm3, %v348_v48  ;;  %v292_v57 = vadd.f32 %v581_v27, %v272_v55  ;;  %v276_v58 = vld [vmem:[#allocation2 + $0x60] sm:$0xff] }
  0xb1   :  { %369 = vst.msk [vmem:[%s680_s3 + $0x10] sm:$0xf] %vm364_vm3, %v352_v54  ;;  %v296_v60 = vadd.f32 %v581_v27, %v276_v58  ;;  %v265_v61 = vld [vmem:[#allocation2 + $0x8] sm:$0xff] }
  0xb2   :  { %vm308_vm4 = vcmp.ge.f32.partialorder %v292_v57, 0.0  ;;  %v324_v63 = vmul.f32 0.2, %v292_v57  ;;  %v285_v0 = vadd.f32 %v581_v27, %v265_v61  ;;  %v269_v1 = vld [vmem:[#allocation2 + $0x28] sm:$0xff]  ;;  %254 = vst.msk [vmem:[#allocation2 + $0x48] sm:$0xff] %vm18_vm0, %v237_v50 }
  0xb3   :  { %vm312_vm5 = vcmp.ge.f32.partialorder %v296_v60, 0.0  ;;  %v328_v2 = vmul.f32 0.2, %v296_v60  ;;  %v289_v3 = vadd.f32 %v581_v27, %v269_v1  ;;  %258 = vst.msk [vmem:[#allocation2 + $0x68] sm:$0xff] %vm18_vm0, %v241_v56 }
  0xb4   :  { %v340_v4 = vsel %vm308_vm4, %v292_v57, %v324_v63  ;;  %vm301_vm6 = vcmp.ge.f32.partialorder %v285_v0, 0.0  ;;  %v317_v5 = vmul.f32 0.2, %v285_v0  ;;  %247 = vst.msk [vmem:[#allocation2 + $0x10] sm:$0xff] %vm18_vm0, %v230_v59 }
  0xb5   :  { %v356_v7 = vpack.c.bf16 %v340_v4, %v340_v4  ;;  %v344_v8 = vsel %vm312_vm5, %v296_v60, %v328_v2  ;;  %vm305_vm7 = vcmp.ge.f32.partialorder %v289_v3, 0.0  ;;  %v321_v9 = vmul.f32 0.2, %v289_v3  ;;  %251 = vst.msk [vmem:[#allocation2 + $0x30] sm:$0xff] %vm18_vm0, %v234_v62  ;;  %v213_v10 = vpop.f32.mrf.mxu2  ;;  %v223_v12 = vpop.f32.mrf.mxu3 }
  0xb6   :  { %v360_v13 = vpack.c.bf16 %v344_v8, %v344_v8  ;;  %v333_v14 = vsel %vm301_vm6, %v285_v0, %v317_v5  ;;  %v195_v16 = vpop.f32.mrf.mxu0  ;;  %v238_v19 = vadd.f32 %v213_v10, %v45_v6  ;;  %v205_v21 = vpop.f32.mrf.mxu1  ;;  %v242_v23 = vadd.f32 %v223_v12, %v49_v11 }
  0xb7   :  { %373 = vst.msk [vmem:[%s680_s3 + $0x20] sm:$0xf] %vm364_vm3, %v356_v7  ;;  %v349_v17 = vpack.c.bf16 %v333_v14, %v333_v14  ;;  %v337_v18 = vsel %vm305_vm7, %v289_v3, %v321_v9  ;;  %v231_v25 = vadd.f32 %v195_v16, %v38_v15  ;;  %v235_v29 = vadd.f32 %v205_v21, %v42_v20 }
  0xb8   :  { %377 = vst.msk [vmem:[%s680_s3 + $0x30] sm:$0xf] %vm364_vm3, %v360_v13  ;;  %v353_v22 = vpack.c.bf16 %v337_v18, %v337_v18 }
  0xb9   :  { %366 = vst.msk [vmem:[%s680_s3 + $0x4] sm:$0xf] %vm364_vm3, %v349_v17  ;;  %v273_v24 = vld [vmem:[#allocation2 + $0x48] sm:$0xff] }
  0xba   :  { %370 = vst.msk [vmem:[%s680_s3 + $0x14] sm:$0xf] %vm364_vm3, %v353_v22  ;;  %v293_v26 = vadd.f32 %v581_v27, %v273_v24  ;;  %v277_v28 = vld [vmem:[#allocation2 + $0x68] sm:$0xff] }
  0xbb   :  { %v297_v30 = vadd.f32 %v581_v27, %v277_v28  ;;  %v266_v31 = vld [vmem:[#allocation2 + $0x10] sm:$0xff]  ;;  %255 = vst.msk [vmem:[#allocation2 + $0x50] sm:$0xff] %vm18_vm0, %v238_v19 }
  0xbc   :  { %vm309_vm8 = vcmp.ge.f32.partialorder %v293_v26, 0.0  ;;  %v325_v33 = vmul.f32 0.2, %v293_v26  ;;  %v286_v34 = vadd.f32 %v581_v27, %v266_v31  ;;  %v270_v35 = vld [vmem:[#allocation2 + $0x30] sm:$0xff]  ;;  %259 = vst.msk [vmem:[#allocation2 + $0x70] sm:$0xff] %vm18_vm0, %v242_v23 }
  0xbd   :  { %vm313_vm9 = vcmp.ge.f32.partialorder %v297_v30, 0.0  ;;  %v329_v36 = vmul.f32 0.2, %v297_v30  ;;  %v290_v37 = vadd.f32 %v581_v27, %v270_v35  ;;  %248 = vst.msk [vmem:[#allocation2 + $0x18] sm:$0xff] %vm18_vm0, %v231_v25  ;;  %v215_v38 = vpop.f32.mrf.mxu2  ;;  %v225_v43 = vpop.f32.mrf.mxu3 }
  0xbe   :  { %v341_v39 = vsel %vm309_vm8, %v293_v26, %v325_v33  ;;  %vm302_vm10 = vcmp.ge.f32.partialorder %v286_v34, 0.0  ;;  %v318_v40 = vmul.f32 0.2, %v286_v34  ;;  %252 = vst.msk [vmem:[#allocation2 + $0x38] sm:$0xff] %vm18_vm0, %v235_v29  ;;  %v239_v41 = vadd.f32 %v215_v38, %v46_v32 }
  0xbf   :  { %v357_v44 = vpack.c.bf16 %v341_v39, %v341_v39  ;;  %v345_v45 = vsel %vm313_vm9, %v297_v30, %v329_v36  ;;  %vm306_vm11 = vcmp.ge.f32.partialorder %v290_v37, 0.0  ;;  %v322_v46 = vmul.f32 0.2, %v290_v37 }
  0xc0   :  { %v361_v47 = vpack.c.bf16 %v345_v45, %v345_v45  ;;  %v334_v48 = vsel %vm302_vm10, %v286_v34, %v318_v40  ;;  %256 = vst.msk [vmem:[#allocation2 + $0x58] sm:$0xff] %vm18_vm0, %v239_v41  ;;  %v243_v51 = vadd.f32 %v225_v43, %v50_v42 }
  0xc1   :  { %374 = vst.msk [vmem:[%s680_s3 + $0x24] sm:$0xf] %vm364_vm3, %v357_v44  ;;  %v350_v49 = vpack.c.bf16 %v334_v48, %v334_v48  ;;  %v338_v50 = vsel %vm306_vm11, %v290_v37, %v322_v46 }
  0xc2   :  { %378 = vst.msk [vmem:[%s680_s3 + $0x34] sm:$0xf] %vm364_vm3, %v361_v47  ;;  %v354_v52 = vpack.c.bf16 %v338_v50, %v338_v50  ;;  %v274_v53 = vld [vmem:[#allocation2 + $0x50] sm:$0xff] }
  0xc3   :  { %367 = vst.msk [vmem:[%s680_s3 + $0x8] sm:$0xf] %vm364_vm3, %v350_v49  ;;  %v294_v54 = vadd.f32 %v581_v27, %v274_v53  ;;  %v278_v55 = vld [vmem:[#allocation2 + $0x70] sm:$0xff] }
  0xc4   :  { %371 = vst.msk [vmem:[%s680_s3 + $0x18] sm:$0xf] %vm364_vm3, %v354_v52  ;;  %v298_v56 = vadd.f32 %v581_v27, %v278_v55  ;;  %v267_v57 = vld [vmem:[#allocation2 + $0x18] sm:$0xff] }
  0xc5   :  { %vm310_vm12 = vcmp.ge.f32.partialorder %v294_v54, 0.0  ;;  %v326_v58 = vmul.f32 0.2, %v294_v54  ;;  %v287_v59 = vadd.f32 %v581_v27, %v267_v57  ;;  %v271_v60 = vld [vmem:[#allocation2 + $0x38] sm:$0xff]  ;;  %260 = vst.msk [vmem:[#allocation2 + $0x78] sm:$0xff] %vm18_vm0, %v243_v51 }
  0xc6   :  { %vm314_vm13 = vcmp.ge.f32.partialorder %v298_v56, 0.0  ;;  %v330_v61 = vmul.f32 0.2, %v298_v56  ;;  %v291_v62 = vadd.f32 %v581_v27, %v271_v60 }
  0xc7   :  { %v342_v63 = vsel %vm310_vm12, %v294_v54, %v326_v58  ;;  %vm303_vm14 = vcmp.ge.f32.partialorder %v287_v59, 0.0  ;;  %v319_v0 = vmul.f32 0.2, %v287_v59  ;;  %v275_v1 = vld [vmem:[#allocation2 + $0x58] sm:$0xff] }
  0xc8   :  { %v358_v2 = vpack.c.bf16 %v342_v63, %v342_v63  ;;  %v346_v3 = vsel %vm314_vm13, %v298_v56, %v330_v61  ;;  %vm307_vm15 = vcmp.ge.f32.partialorder %v291_v62, 0.0  ;;  %v323_v4 = vmul.f32 0.2, %v291_v62 }
  0xc9   :  { %v362_v5 = vpack.c.bf16 %v346_v3, %v346_v3  ;;  %v335_v6 = vsel %vm303_vm14, %v287_v59, %v319_v0  ;;  %v295_v7 = vadd.f32 %v581_v27, %v275_v1 }
  0xca   :  { %375 = vst.msk [vmem:[%s680_s3 + $0x28] sm:$0xf] %vm364_vm3, %v358_v2  ;;  %v351_v8 = vpack.c.bf16 %v335_v6, %v335_v6  ;;  %v339_v9 = vsel %vm307_vm15, %v291_v62, %v323_v4 }
  0xcb   :  { %379 = vst.msk [vmem:[%s680_s3 + $0x38] sm:$0xf] %vm364_vm3, %v362_v5  ;;  %v355_v10 = vpack.c.bf16 %v339_v9, %v339_v9  ;;  %vm311_vm0 = vcmp.ge.f32.partialorder %v295_v7, 0.0  ;;  %v327_v11 = vmul.f32 0.2, %v295_v7 }
  0xcc   :  { %368 = vst.msk [vmem:[%s680_s3 + $0xc] sm:$0xf] %vm364_vm3, %v351_v8  ;;  %v279_v12 = vld [vmem:[#allocation2 + $0x78] sm:$0xff] }
  0xcd   :  { %372 = vst.msk [vmem:[%s680_s3 + $0x1c] sm:$0xf] %vm364_vm3, %v355_v10  ;;  %v343_v13 = vsel %vm311_vm0, %v295_v7, %v327_v11  ;;  %v299_v14 = vadd.f32 %v581_v27, %v279_v12 }
  0xce   :  { %v359_v15 = vpack.c.bf16 %v343_v13, %v343_v13 }
  0xcf   :  { %vm315_vm1 = vcmp.ge.f32.partialorder %v299_v14, 0.0  ;;  %v331_v16 = vmul.f32 0.2, %v299_v14 }
  0xd0   :  { %376 = vst.msk [vmem:[%s680_s3 + $0x2c] sm:$0xf] %vm364_vm3, %v359_v15 }
  0xd1   :  { %v347_v17 = vsel %vm315_vm1, %v299_v14, %v331_v16 }
  0xd2   :  { %v363_v18 = vpack.c.bf16 %v347_v17, %v347_v17 }
  0xd4   :  { %380 = vst.msk [vmem:[%s680_s3 + $0x3c] sm:$0xf] %vm364_vm3, %v363_v18 }

// kernel: fwd.5
= control target key start
LH: loop header
LB: loop body
LE: loop exit
PB: predicated region body
PF: predicated region fallthrough
CT: control target
= control target key end

     0   :  { %vm18_vm0 = vcmask 523264   ;;  %v658_v56 = vmov 0.0   ;;  %vm447_vm2 = vcmask 519168   ;;  %s850_s1 = inlined_call_operand.vmem [shape: bf16[512,64], index: 1, kind: input, shape index: {}]   ;;  %s851_s0 = inlined_call_operand.vmem [shape: bf16[32,512], index: 0, kind: input, shape index: {}]   ;;  %s852_s2 = inlined_call_operand.vmem [shape: f32[1,64], index: 2, kind: input, shape index: {}]   ;;  %s853_s3 = inlined_call_operand.vmem [shape: bf16[32,64], index: 3, kind: output, shape index: {}]  }
   0x1   :  { %v631_v0 = vld [vmem:[%s850_s1 + $0x38] sm:$0xff]  ;;  %v630_v4 = vld [vmem:[%s850_s1 + $0x30] sm:$0xff]  ;;  %v629_v8 = vld [vmem:[%s850_s1 + $0x28] sm:$0xff]  ;;  %19 = vst.msk [vmem:[#allocation2] sm:$0xff] %vm18_vm0, %v658_v56 }
   0x2   :  { %v639_v1 = vld [vmem:[%s850_s1 + $0x78] sm:$0xff]  ;;  %331 = vmatpush.bf16.msra.mxu0 %v631_v0  ;;  %v638_v5 = vld [vmem:[%s850_s1 + $0x70] sm:$0xff]  ;;  %v637_v9 = vld [vmem:[%s850_s1 + $0x68] sm:$0xff]  ;;  %20 = vst.msk [vmem:[#allocation2 + $0x8] sm:$0xff] %vm18_vm0, %v658_v56 }
   0x3   :  { %v647_v2 = vld [vmem:[%s850_s1 + $0xb8] sm:$0xff]  ;;  %350 = vmatpush.bf16.msra.mxu1 %v639_v1  ;;  %v646_v6 = vld [vmem:[%s850_s1 + $0xb0] sm:$0xff]  ;;  %v645_v10 = vld [vmem:[%s850_s1 + $0xa8] sm:$0xff]  ;;  %21 = vst.msk [vmem:[#allocation2 + $0x10] sm:$0xff] %vm18_vm0, %v658_v56 }
   0x4   :  { %v655_v3 = vld [vmem:[%s850_s1 + $0xf8] sm:$0xff]  ;;  %369 = vmatpush.bf16.msra.mxu2 %v647_v2  ;;  %v654_v7 = vld [vmem:[%s850_s1 + $0xf0] sm:$0xff]  ;;  %v653_v11 = vld [vmem:[%s850_s1 + $0xe8] sm:$0xff]  ;;  %22 = vst.msk [vmem:[#allocation2 + $0x18] sm:$0xff] %vm18_vm0, %v658_v56 }
   0x5   :  { %388 = vmatpush.bf16.msra.mxu3 %v655_v3  ;;  %v628_v12 = vld [vmem:[%s850_s1 + $0x20] sm:$0xff]  ;;  %v627_v16 = vld [vmem:[%s850_s1 + $0x18] sm:$0xff]  ;;  %v626_v20 = vld [vmem:[%s850_s1 + $0x10] sm:$0xff] }
   0x6   :  { %332 = vmatpush.bf16.msra.mxu0 %v630_v4  ;;  %v636_v13 = vld [vmem:[%s850_s1 + $0x60] sm:$0xff]  ;;  %v635_v17 = vld [vmem:[%s850_s1 + $0x58] sm:$0xff]  ;;  %v634_v21 = vld [vmem:[%s850_s1 + $0x50] sm:$0xff] }
   0x7   :  { %351 = vmatpush.bf16.msra.mxu1 %v638_v5  ;;  %v644_v14 = vld [vmem:[%s850_s1 + $0xa0] sm:$0xff]  ;;  %v643_v18 = vld [vmem:[%s850_s1 + $0x98] sm:$0xff]  ;;  %v642_v22 = vld [vmem:[%s850_s1 + $0x90] sm:$0xff] }
   0x8   :  { %370 = vmatpush.bf16.msra.mxu2 %v646_v6  ;;  %v652_v15 = vld [vmem:[%s850_s1 + $0xe0] sm:$0xff]  ;;  %v651_v19 = vld [vmem:[%s850_s1 + $0xd8] sm:$0xff]  ;;  %v650_v23 = vld [vmem:[%s850_s1 + $0xd0] sm:$0xff] }
   0x9   :  { %389 = vmatpush.bf16.msra.mxu3 %v654_v7  ;;  %v625_v24 = vld [vmem:[%s850_s1 + $0x8] sm:$0xff]  ;;  %v624_v28 = vld [vmem:[%s850_s1] sm:$0xff]  ;;  %v618_v33 = vld [vmem:[%s851_s0 + $0xc] sm:$0xf0] }
   0xa   :  { %333 = vmatpush.bf16.msra.mxu0 %v629_v8  ;;  %v633_v25 = vld [vmem:[%s850_s1 + $0x48] sm:$0xff]  ;;  %v632_v29 = vld [vmem:[%s850_s1 + $0x40] sm:$0xff]  ;;  %v460_v35 = vld [vmem:[%s851_s0 + $0x10] sm:$0xf0] }
   0xb   :  { %352 = vmatpush.bf16.msra.mxu1 %v637_v9  ;;  %v641_v26 = vld [vmem:[%s850_s1 + $0x88] sm:$0xff]  ;;  %v640_v30 = vld [vmem:[%s850_s1 + $0x80] sm:$0xff]  ;;  %v619_v37 = vld [vmem:[%s851_s0 + $0x14] sm:$0xf0] }
   0xc   :  { %371 = vmatpush.bf16.msra.mxu2 %v645_v10  ;;  %v649_v27 = vld [vmem:[%s850_s1 + $0xc8] sm:$0xff]  ;;  %v648_v31 = vld [vmem:[%s850_s1 + $0xc0] sm:$0xff]  ;;  %v468_v39 = vld [vmem:[%s851_s0 + $0x18] sm:$0xf0] }
   0xd   :  { %390 = vmatpush.bf16.msra.mxu3 %v653_v11  ;;  %v458_v32 = vld [vmem:[%s851_s0] sm:$0xf]  ;;  %v616_v34 = vld [vmem:[%s851_s0 + $0x4] sm:$0xf]  ;;  %v466_v36 = vld [vmem:[%s851_s0 + $0x8] sm:$0xf] }
   0xe   :  { %334 = vmatpush.bf16.msra.mxu0 %v628_v12  ;;  %v617_v38 = vld [vmem:[%s851_s0 + $0xc] sm:$0xf]  ;;  %v459_v40 = vor.u32 %v618_v33, %v458_v32  ;;  %v463_v41 = vor.u32 %v616_v34, %v460_v35  ;;  %v467_v42 = vor.u32 %v619_v37, %v466_v36  ;;  %v474_v44 = vld [vmem:[%s851_s0 + $0x20] sm:$0xf]  ;;  %v622_v45 = vld [vmem:[%s851_s0 + $0x2c] sm:$0xf0] }
   0xf   :  { %353 = vmatpush.bf16.msra.mxu1 %v636_v13  ;;  %v471_v43 = vor.u32 %v617_v38, %v468_v39  ;;  %v620_v46 = vld [vmem:[%s851_s0 + $0x24] sm:$0xf]  ;;  %v476_v47 = vld [vmem:[%s851_s0 + $0x30] sm:$0xf0]  ;;  %v482_v48 = vld [vmem:[%s851_s0 + $0x28] sm:$0xf]  ;;  %v475_v52 = vor.u32 %v622_v45, %v474_v44 }
  0x10   :  { %372 = vmatpush.bf16.msra.mxu2 %v644_v14  ;;  %v623_v49 = vld [vmem:[%s851_s0 + $0x34] sm:$0xf0]  ;;  %v621_v50 = vld [vmem:[%s851_s0 + $0x2c] sm:$0xf]  ;;  %v484_v51 = vld [vmem:[%s851_s0 + $0x38] sm:$0xf0]  ;;  %v479_v53 = vor.u32 %v620_v46, %v476_v47 }
  0x11   :  { %391 = vmatpush.bf16.msra.mxu3 %v652_v15  ;;  %v483_v54 = vor.u32 %v623_v49, %v482_v48  ;;  %v487_v55 = vor.u32 %v621_v50, %v484_v51  ;;  %v23_v1 = vld [vmem:[#allocation2] sm:$0xff]  ;;  %v24_v8 = vld [vmem:[#allocation2 + $0x8] sm:$0xff]  ;;  %v26_v34 = vld [vmem:[#allocation2 + $0x18] sm:$0xff] }
  0x12   :  { %335 = vmatpush.bf16.msra.mxu0 %v627_v16  ;;  %v657_v11 = vld [vmem:[%s852_s2] ss:$0 sm:$0xff] }
  0x13   :  { %354 = vmatpush.bf16.msra.mxu1 %v635_v17 }
  0x14   :  { %373 = vmatpush.bf16.msra.mxu2 %v643_v18 }
  0x15   :  { %392 = vmatpush.bf16.msra.mxu3 %v651_v19 }
  0x16   :  { %336 = vmatpush.bf16.msra.mxu0 %v626_v20 }
  0x17   :  { %355 = vmatpush.bf16.msra.mxu1 %v634_v21  ;;  %v25_v21 = vld [vmem:[#allocation2 + $0x10] sm:$0xff] }
  0x18   :  { %374 = vmatpush.bf16.msra.mxu2 %v642_v22 }
  0x19   :  { %393 = vmatpush.bf16.msra.mxu3 %v650_v23 }
  0x1a   :  { %337 = vmatpush.bf16.msra.mxu0 %v625_v24 }
  0x1b   :  { %356 = vmatpush.bf16.msra.mxu1 %v633_v25 }
  0x1c   :  { %375 = vmatpush.bf16.msra.mxu2 %v641_v26 }
  0x1d   :  { %394 = vmatpush.bf16.msra.mxu3 %v649_v27 }
  0x1e   :  { %338 = vmatpush.bf16.msra.mxu0 %v624_v28 }
  0x1f   :  { %357 = vmatpush.bf16.msra.mxu1 %v632_v29 }
  0x20   :  { %376 = vmatpush.bf16.msra.mxu2 %v640_v30 }
  0x21   :  { %395 = vmatpush.bf16.msra.mxu3 %v648_v31  ;;  %339 = vmatmul.bf16.vlgmr.msra.gmra.mxu0 %v459_v40 }
  0x22   :  { %358 = vmatmul.bf16.vlgmr.msra.gmra.mxu1 %v463_v41 }
  0x23   :  { %377 = vmatmul.bf16.vlgmr.msra.gmra.mxu2 %v467_v42 }
  0x24   :  { %396 = vmatmul.bf16.vlgmr.msra.gmra.mxu3 %v471_v43 }
  0x31   :  { %344 = vmatmul.bf16.gmra.mxu0 %v475_v52 }
  0x32   :  { %363 = vmatmul.bf16.gmra.mxu1 %v479_v53 }
  0x33   :  { %382 = vmatmul.bf16.gmra.mxu2 %v483_v54 }
  0x34   :  { %401 = vmatmul.bf16.gmra.mxu3 %v487_v55 }
  0x9e   :  { %v340_v57 = vpop.f32.mrf.mxu0 }
  0x9f   :  { %v359_v58 = vpop.f32.mrf.mxu1 }
  0xa0   :  { %v360_v59 = vadd.f32 %v359_v58, %v340_v57 }
  0xa6   :  { %v378_v60 = vpop.f32.mrf.mxu2  ;;  %v342_v63 = vpop.f32.mrf.mxu0 }
  0xa7   :  { %v397_v61 = vpop.f32.mrf.mxu3  ;;  %v379_v62 = vadd.f32 %v378_v60, %v360_v59  ;;  %v361_v0 = vpop.f32.mrf.mxu1 }
  0xa8   :  { %v362_v4 = vadd.f32 %v361_v0, %v342_v63 }
  0xa9   :  { %v398_v2 = vadd.f32 %v397_v61, %v379_v62 }
  0xab   :  { %v407_v3 = vadd.f32 %v398_v2, %v23_v1 }
  0xad   :  { %412 = vst.msk [vmem:[#allocation2] sm:$0xff] %vm18_vm0, %v407_v3 }
  0xae   :  { %v380_v5 = vpop.f32.mrf.mxu2  ;;  %v345_v9 = vpop.f32.mrf.mxu0 }
  0xaf   :  { %v399_v6 = vpop.f32.mrf.mxu3  ;;  %v381_v7 = vadd.f32 %v380_v5, %v362_v4  ;;  %v364_v10 = vpop.f32.mrf.mxu1 }
  0xb0   :  { %v365_v14 = vadd.f32 %v364_v10, %v345_v9 }
  0xb1   :  { %v400_v12 = vadd.f32 %v399_v6, %v381_v7 }
  0xb3   :  { %v408_v13 = vadd.f32 %v400_v12, %v24_v8 }
  0xb4   :  { %v419_v15 = vld [vmem:[#allocation2] sm:$0xff] }
  0xb5   :  { %v427_v16 = vadd.f32 %v657_v11, %v419_v15  ;;  %413 = vst.msk [vmem:[#allocation2 + $0x8] sm:$0xff] %vm18_vm0, %v408_v13 }
  0xb6   :  { %v383_v17 = vpop.f32.mrf.mxu2  ;;  %v347_v25 = vpop.f32.mrf.mxu0 }
  0xb7   :  { %v402_v18 = vpop.f32.mrf.mxu3  ;;  %vm431_vm1 = vcmp.ge.f32.partialorder %v427_v16, 0.0  ;;  %v435_v19 = vmul.f32 0.2, %v427_v16  ;;  %v384_v20 = vadd.f32 %v383_v17, %v365_v14  ;;  %v366_v26 = vpop.f32.mrf.mxu1 }
  0xb8   :  { %v367_v30 = vadd.f32 %v366_v26, %v347_v25 }
  0xb9   :  { %v439_v22 = vsel %vm431_vm1, %v427_v16, %v435_v19  ;;  %v403_v23 = vadd.f32 %v402_v18, %v384_v20 }
  0xba   :  { %v443_v24 = vpack.c.bf16 %v439_v22, %v439_v22 }
  0xbb   :  { %v409_v27 = vadd.f32 %v403_v23, %v25_v21 }
  0xbc   :  { %448 = vst.msk [vmem:[%s853_s3] sm:$0xf] %vm447_vm2, %v443_v24  ;;  %v420_v28 = vld [vmem:[#allocation2 + $0x8] sm:$0xff] }
  0xbd   :  { %v428_v29 = vadd.f32 %v657_v11, %v420_v28  ;;  %414 = vst.msk [vmem:[#allocation2 + $0x10] sm:$0xff] %vm18_vm0, %v409_v27 }
  0xbe   :  { %v385_v31 = vpop.f32.mrf.mxu2 }
  0xbf   :  { %vm432_vm3 = vcmp.ge.f32.partialorder %v428_v29, 0.0  ;;  %v436_v32 = vmul.f32 0.2, %v428_v29  ;;  %v386_v33 = vadd.f32 %v385_v31, %v367_v30  ;;  %v404_v35 = vpop.f32.mrf.mxu3 }
  0xc1   :  { %v440_v36 = vsel %vm432_vm3, %v428_v29, %v436_v32  ;;  %v405_v37 = vadd.f32 %v404_v35, %v386_v33 }
  0xc2   :  { %v444_v38 = vpack.c.bf16 %v440_v36, %v440_v36 }
  0xc3   :  { %v410_v39 = vadd.f32 %v405_v37, %v26_v34 }
  0xc4   :  { %449 = vst.msk [vmem:[%s853_s3 + $0x4] sm:$0xf] %vm447_vm2, %v444_v38  ;;  %v421_v40 = vld [vmem:[#allocation2 + $0x10] sm:$0xff] }
  0xc5   :  { %v429_v41 = vadd.f32 %v657_v11, %v421_v40  ;;  %415 = vst.msk [vmem:[#allocation2 + $0x18] sm:$0xff] %vm18_vm0, %v410_v39 }
  0xc7   :  { %vm433_vm4 = vcmp.ge.f32.partialorder %v429_v41, 0.0  ;;  %v437_v42 = vmul.f32 0.2, %v429_v41 }
  0xc9   :  { %v441_v43 = vsel %vm433_vm4, %v429_v41, %v437_v42 }
  0xca   :  { %v445_v44 = vpack.c.bf16 %v441_v43, %v441_v43 }
  0xcc   :  { %450 = vst.msk [vmem:[%s853_s3 + $0x8] sm:$0xf] %vm447_vm2, %v445_v44  ;;  %v422_v45 = vld [vmem:[#allocation2 + $0x18] sm:$0xff] }
  0xcd   :  { %v430_v46 = vadd.f32 %v657_v11, %v422_v45 }
  0xcf   :  { %vm434_vm5 = vcmp.ge.f32.partialorder %v430_v46, 0.0  ;;  %v438_v47 = vmul.f32 0.2, %v430_v46 }
  0xd1   :  { %v442_v48 = vsel %vm434_vm5, %v430_v46, %v438_v47 }
  0xd2   :  { %v446_v49 = vpack.c.bf16 %v442_v48, %v442_v48 }
  0xd4   :  { %451 = vst.msk [vmem:[%s853_s3 + $0xc] sm:$0xf] %vm447_vm2, %v446_v49 }

// kernel: fwd.6
= control target key start
LH: loop header
LB: loop body
LE: loop exit
PB: predicated region body
PF: predicated region fallthrough
CT: control target
= control target key end

     0   :  { %s1239_s1 = inlined_call_operand.vmem [shape: bf16[1024,128], index: 1, kind: input, shape index: {}]   ;;  %s1240_s0 = inlined_call_operand.vmem [shape: bf16[8,1024], index: 0, kind: input, shape index: {}]   ;;  %s1241_s2 = inlined_call_operand.vmem [shape: f32[1,128], index: 2, kind: input, shape index: {}]   ;;  %s1242_s3 = inlined_call_operand.vmem [shape: bf16[8,128], index: 3, kind: output, shape index: {}]  }
   0x1   :  { %v951_v0 = vld [vmem:[%s1239_s1 + $0x38] sm:$0xff]  ;;  %v950_v4 = vld [vmem:[%s1239_s1 + $0x30] sm:$0xff]  ;;  %v949_v8 = vld [vmem:[%s1239_s1 + $0x28] sm:$0xff] }
   0x2   :  { %v959_v1 = vld [vmem:[%s1239_s1 + $0x78] sm:$0xff]  ;;  %564 = vmatpush.bf16.msra.mxu0 %v951_v0  ;;  %v958_v5 = vld [vmem:[%s1239_s1 + $0x70] sm:$0xff]  ;;  %v957_v9 = vld [vmem:[%s1239_s1 + $0x68] sm:$0xff] }
   0x3   :  { %v967_v2 = vld [vmem:[%s1239_s1 + $0xb8] sm:$0xff]  ;;  %577 = vmatpush.bf16.msra.mxu1 %v959_v1  ;;  %v966_v6 = vld [vmem:[%s1239_s1 + $0xb0] sm:$0xff]  ;;  %v965_v10 = vld [vmem:[%s1239_s1 + $0xa8] sm:$0xff] }
   0x4   :  { %v975_v3 = vld [vmem:[%s1239_s1 + $0xf8] sm:$0xff]  ;;  %590 = vmatpush.bf16.msra.mxu2 %v967_v2  ;;  %v974_v7 = vld [vmem:[%s1239_s1 + $0xf0] sm:$0xff]  ;;  %v973_v11 = vld [vmem:[%s1239_s1 + $0xe8] sm:$0xff] }
   0x5   :  { %603 = vmatpush.bf16.msra.mxu3 %v975_v3  ;;  %v948_v12 = vld [vmem:[%s1239_s1 + $0x20] sm:$0xff]  ;;  %v947_v16 = vld [vmem:[%s1239_s1 + $0x18] sm:$0xff]  ;;  %v946_v20 = vld [vmem:[%s1239_s1 + $0x10] sm:$0xff] }
   0x6   :  { %565 = vmatpush.bf16.msra.mxu0 %v950_v4  ;;  %v956_v13 = vld [vmem:[%s1239_s1 + $0x60] sm:$0xff]  ;;  %v955_v17 = vld [vmem:[%s1239_s1 + $0x58] sm:$0xff]  ;;  %v954_v21 = vld [vmem:[%s1239_s1 + $0x50] sm:$0xff] }
   0x7   :  { %578 = vmatpush.bf16.msra.mxu1 %v958_v5  ;;  %v964_v14 = vld [vmem:[%s1239_s1 + $0xa0] sm:$0xff]  ;;  %v963_v18 = vld [vmem:[%s1239_s1 + $0x98] sm:$0xff]  ;;  %v962_v22 = vld [vmem:[%s1239_s1 + $0x90] sm:$0xff] }
   0x8   :  { %591 = vmatpush.bf16.msra.mxu2 %v966_v6  ;;  %v972_v15 = vld [vmem:[%s1239_s1 + $0xe0] sm:$0xff]  ;;  %v971_v19 = vld [vmem:[%s1239_s1 + $0xd8] sm:$0xff]  ;;  %v970_v23 = vld [vmem:[%s1239_s1 + $0xd0] sm:$0xff] }
   0x9   :  { %604 = vmatpush.bf16.msra.mxu3 %v974_v7  ;;  %v945_v24 = vld [vmem:[%s1239_s1 + $0x8] sm:$0xff]  ;;  %v20_v29 = vld [vmem:[%s1240_s0] sm:$0xff]  ;;  %v983_v38 = vld [vmem:[%s1239_s1 + $0x138] sm:$0xff] }
   0xa   :  { %566 = vmatpush.bf16.msra.mxu0 %v949_v8  ;;  %v953_v25 = vld [vmem:[%s1239_s1 + $0x48] sm:$0xff]  ;;  %v944_v30 = vld [vmem:[%s1239_s1] sm:$0xff]  ;;  %v156_v33 = vunpack.c.l.b16 %v20_v29  ;;  %v157_v37 = vunpack.c.h.b16 %v20_v29  ;;  %v991_v39 = vld [vmem:[%s1239_s1 + $0x178] sm:$0xff] }
   0xb   :  { %579 = vmatpush.bf16.msra.mxu1 %v957_v9  ;;  %v961_v26 = vld [vmem:[%s1239_s1 + $0x88] sm:$0xff]  ;;  %v952_v31 = vld [vmem:[%s1239_s1 + $0x40] sm:$0xff]  ;;  %v999_v40 = vld [vmem:[%s1239_s1 + $0x1b8] sm:$0xff] }
   0xc   :  { %592 = vmatpush.bf16.msra.mxu2 %v965_v10  ;;  %v969_v27 = vld [vmem:[%s1239_s1 + $0xc8] sm:$0xff]  ;;  %v960_v34 = vld [vmem:[%s1239_s1 + $0x80] sm:$0xff]  ;;  %v1007_v41 = vld [vmem:[%s1239_s1 + $0x1f8] sm:$0xff]  ;;  %v164_v43 = vpack.c.b16 %v156_v33, %v156_v33  ;;  %v165_v45 = vpack.c.b16 %v157_v37, %v157_v37 }
   0xd   :  { %605 = vmatpush.bf16.msra.mxu3 %v973_v11  ;;  %v21_v28 = vld [vmem:[%s1240_s0 + $0x8] sm:$0xff]  ;;  %v968_v35 = vld [vmem:[%s1239_s1 + $0xc0] sm:$0xff]  ;;  %v982_v46 = vld [vmem:[%s1239_s1 + $0x130] sm:$0xff] }
   0xe   :  { %567 = vmatpush.bf16.msra.mxu0 %v948_v12  ;;  %v158_v32 = vunpack.c.l.b16 %v21_v28  ;;  %v159_v36 = vunpack.c.h.b16 %v21_v28  ;;  %v990_v47 = vld [vmem:[%s1239_s1 + $0x170] sm:$0xff]  ;;  %v981_v50 = vld [vmem:[%s1239_s1 + $0x128] sm:$0xff]  ;;  %v980_v54 = vld [vmem:[%s1239_s1 + $0x120] sm:$0xff] }
   0xf   :  { %580 = vmatpush.bf16.msra.mxu1 %v956_v13  ;;  %v998_v48 = vld [vmem:[%s1239_s1 + $0x1b0] sm:$0xff]  ;;  %v989_v51 = vld [vmem:[%s1239_s1 + $0x168] sm:$0xff]  ;;  %v988_v55 = vld [vmem:[%s1239_s1 + $0x160] sm:$0xff] }
  0x10   :  { %593 = vmatpush.bf16.msra.mxu2 %v964_v14  ;;  %v166_v42 = vpack.c.b16 %v158_v32, %v158_v32  ;;  %v167_v44 = vpack.c.b16 %v159_v36, %v159_v36  ;;  %v1006_v49 = vld [vmem:[%s1239_s1 + $0x1f0] sm:$0xff]  ;;  %v997_v52 = vld [vmem:[%s1239_s1 + $0x1a8] sm:$0xff]  ;;  %v996_v56 = vld [vmem:[%s1239_s1 + $0x1a0] sm:$0xff] }
  0x11   :  { %606 = vmatpush.bf16.msra.mxu3 %v972_v15  ;;  %v1005_v53 = vld [vmem:[%s1239_s1 + $0x1e8] sm:$0xff]  ;;  %v1004_v57 = vld [vmem:[%s1239_s1 + $0x1e0] sm:$0xff]  ;;  %v979_v58 = vld [vmem:[%s1239_s1 + $0x118] sm:$0xff] }
  0x12   :  { %568 = vmatpush.bf16.msra.mxu0 %v947_v16  ;;  %v987_v59 = vld [vmem:[%s1239_s1 + $0x158] sm:$0xff]  ;;  %v978_v62 = vld [vmem:[%s1239_s1 + $0x110] sm:$0xff]  ;;  %v977_v2 = vld [vmem:[%s1239_s1 + $0x108] sm:$0xff] }
  0x13   :  { %581 = vmatpush.bf16.msra.mxu1 %v955_v17  ;;  %v995_v60 = vld [vmem:[%s1239_s1 + $0x198] sm:$0xff]  ;;  %v986_v63 = vld [vmem:[%s1239_s1 + $0x150] sm:$0xff]  ;;  %v985_v3 = vld [vmem:[%s1239_s1 + $0x148] sm:$0xff] }
  0x14   :  { %594 = vmatpush.bf16.msra.mxu2 %v963_v18  ;;  %v1003_v61 = vld [vmem:[%s1239_s1 + $0x1d8] sm:$0xff]  ;;  %v994_v0 = vld [vmem:[%s1239_s1 + $0x190] sm:$0xff]  ;;  %v993_v5 = vld [vmem:[%s1239_s1 + $0x188] sm:$0xff] }
  0x15   :  { %607 = vmatpush.bf16.msra.mxu3 %v971_v19  ;;  %v1002_v1 = vld [vmem:[%s1239_s1 + $0x1d0] sm:$0xff]  ;;  %v1001_v6 = vld [vmem:[%s1239_s1 + $0x1c8] sm:$0xff]  ;;  %v23_v7 = vld [vmem:[%s1240_s0 + $0x18] sm:$0xff] }
  0x16   :  { %569 = vmatpush.bf16.msra.mxu0 %v946_v20  ;;  %v22_v4 = vld [vmem:[%s1240_s0 + $0x10] sm:$0xff]  ;;  %v976_v10 = vld [vmem:[%s1239_s1 + $0x100] sm:$0xff]  ;;  %v162_v12 = vunpack.c.l.b16 %v23_v7  ;;  %v163_v13 = vunpack.c.h.b16 %v23_v7 }
  0x17   :  { %582 = vmatpush.bf16.msra.mxu1 %v954_v21  ;;  %v160_v8 = vunpack.c.l.b16 %v22_v4  ;;  %v161_v9 = vunpack.c.h.b16 %v22_v4  ;;  %v984_v11 = vld [vmem:[%s1239_s1 + $0x140] sm:$0xff] }
  0x18   :  { %595 = vmatpush.bf16.msra.mxu2 %v962_v22  ;;  %v992_v14 = vld [vmem:[%s1239_s1 + $0x180] sm:$0xff]  ;;  %v170_v18 = vpack.c.b16 %v162_v12, %v162_v12  ;;  %v171_v19 = vpack.c.b16 %v163_v13, %v163_v13 }
  0x19   :  { %608 = vmatpush.bf16.msra.mxu3 %v970_v23  ;;  %v1000_v15 = vld [vmem:[%s1239_s1 + $0x1c0] sm:$0xff]  ;;  %v168_v16 = vpack.c.b16 %v160_v8, %v160_v8  ;;  %v169_v17 = vpack.c.b16 %v161_v9, %v161_v9 }
  0x1a   :  { %570 = vmatpush.bf16.msra.mxu0 %v945_v24 }
  0x1b   :  { %583 = vmatpush.bf16.msra.mxu1 %v953_v25 }
  0x1c   :  { %596 = vmatpush.bf16.msra.mxu2 %v961_v26 }
  0x1d   :  { %609 = vmatpush.bf16.msra.mxu3 %v969_v27 }
  0x1e   :  { %571 = vmatpush.bf16.msra.mxu0 %v944_v30 }
  0x1f   :  { %584 = vmatpush.bf16.msra.mxu1 %v952_v31 }
  0x20   :  { %597 = vmatpush.bf16.msra.mxu2 %v960_v34 }
  0x21   :  { %610 = vmatpush.bf16.msra.mxu3 %v968_v35  ;;  %572 = vmatmul.bf16.vlgmr.msra.gmra.mxu0 %v164_v43 }
  0x22   :  { %616 = vmatpush.bf16.msrb.mxu0 %v983_v38  ;;  %585 = vmatmul.bf16.vlgmr.msra.gmra.mxu1 %v165_v45  ;;  %v1008_v38 = vld [vmem:[%s1241_s2] ss:$0 sm:$0xff] }
  0x23   :  { %629 = vmatpush.bf16.msrb.mxu1 %v991_v39  ;;  %598 = vmatmul.bf16.vlgmr.msra.gmra.mxu2 %v166_v42 }
  0x24   :  { %642 = vmatpush.bf16.msrb.mxu2 %v999_v40  ;;  %611 = vmatmul.bf16.vlgmr.msra.gmra.mxu3 %v167_v44 }
  0x25   :  { %655 = vmatpush.bf16.msrb.mxu3 %v1007_v41 }
  0x26   :  { %617 = vmatpush.bf16.msrb.mxu0 %v982_v46 }
  0x27   :  { %630 = vmatpush.bf16.msrb.mxu1 %v990_v47 }
  0x28   :  { %643 = vmatpush.bf16.msrb.mxu2 %v998_v48 }
  0x29   :  { %656 = vmatpush.bf16.msrb.mxu3 %v1006_v49 }
  0x2a   :  { %618 = vmatpush.bf16.msrb.mxu0 %v981_v50 }
  0x2b   :  { %631 = vmatpush.bf16.msrb.mxu1 %v989_v51 }
  0x2c   :  { %644 = vmatpush.bf16.msrb.mxu2 %v997_v52 }
  0x2d   :  { %657 = vmatpush.bf16.msrb.mxu3 %v1005_v53 }
  0x2e   :  { %619 = vmatpush.bf16.msrb.mxu0 %v980_v54 }
  0x2f   :  { %632 = vmatpush.bf16.msrb.mxu1 %v988_v55 }
  0x30   :  { %645 = vmatpush.bf16.msrb.mxu2 %v996_v56 }
  0x31   :  { %658 = vmatpush.bf16.msrb.mxu3 %v1004_v57 }
  0x32   :  { %620 = vmatpush.bf16.msrb.mxu0 %v979_v58 }
  0x33   :  { %633 = vmatpush.bf16.msrb.mxu1 %v987_v59 }
  0x34   :  { %646 = vmatpush.bf16.msrb.mxu2 %v995_v60 }
  0x35   :  { %659 = vmatpush.bf16.msrb.mxu3 %v1003_v61 }
  0x36   :  { %621 = vmatpush.bf16.msrb.mxu0 %v978_v62 }
  0x37   :  { %634 = vmatpush.bf16.msrb.mxu1 %v986_v63 }
  0x38   :  { %647 = vmatpush.bf16.msrb.mxu2 %v994_v0 }
  0x39   :  { %660 = vmatpush.bf16.msrb.mxu3 %v1002_v1 }
  0x3a   :  { %622 = vmatpush.bf16.msrb.mxu0 %v977_v2 }
  0x3b   :  { %635 = vmatpush.bf16.msrb.mxu1 %v985_v3 }
  0x3c   :  { %648 = vmatpush.bf16.msrb.mxu2 %v993_v5 }
  0x3d   :  { %661 = vmatpush.bf16.msrb.mxu3 %v1001_v6 }
  0x3e   :  { %623 = vmatpush.bf16.msrb.mxu0 %v976_v10 }
  0x3f   :  { %636 = vmatpush.bf16.msrb.mxu1 %v984_v11 }
  0x40   :  { %649 = vmatpush.bf16.msrb.mxu2 %v992_v14 }
  0x41   :  { %662 = vmatpush.bf16.msrb.mxu3 %v1000_v15  ;;  %624 = vmatmul.bf16.vlgmr.msrb.gmra.mxu0 %v168_v16 }
  0x42   :  { %637 = vmatmul.bf16.vlgmr.msrb.gmra.mxu1 %v169_v17 }
  0x43   :  { %650 = vmatmul.bf16.vlgmr.msrb.gmra.mxu2 %v170_v18 }
  0x44   :  { %663 = vmatmul.bf16.vlgmr.msrb.gmra.mxu3 %v171_v19 }
  0x9e   :  { %v573_v20 = vpop.f32.mrf.mxu0 }
  0x9f   :  { %v586_v21 = vpop.f32.mrf.mxu1 }
  0xa0   :  { %v587_v28 = vadd.f32 %v586_v21, %v573_v20 }
  0xa6   :  { %v599_v22 = vpop.f32.mrf.mxu2  ;;  %v575_v24 = vpop.f32.mrf.mxu0 }
  0xa7   :  { %v612_v23 = vpop.f32.mrf.mxu3  ;;  %v588_v25 = vpop.f32.mrf.mxu1  ;;  %v600_v29 = vadd.f32 %v599_v22, %v587_v28 }
  0xa9   :  { %v613_v30 = vadd.f32 %v612_v23, %v600_v29 }
  0xae   :  { %v601_v26 = vpop.f32.mrf.mxu2 }
  0xaf   :  { %v614_v27 = vpop.f32.mrf.mxu3 }
  0xbe   :  { %v625_v31 = vpop.f32.mrf.mxu0 }
  0xbf   :  { %v638_v32 = vpop.f32.mrf.mxu1  ;;  %v626_v33 = vadd.f32 %v625_v31, %v613_v30 }
  0xc1   :  { %v639_v34 = vadd.f32 %v638_v32, %v626_v33 }
  0xc6   :  { %v651_v35 = vpop.f32.mrf.mxu2  ;;  %v627_v39 = vpop.f32.mrf.mxu0 }
  0xc7   :  { %v664_v36 = vpop.f32.mrf.mxu3  ;;  %v652_v37 = vadd.f32 %v651_v35, %v639_v34  ;;  %v640_v40 = vpop.f32.mrf.mxu1 }
  0xc9   :  { %v665_v41 = vadd.f32 %v664_v36, %v652_v37 }
  0xcb   :  { %v678_v42 = vadd.f32 %v1008_v38, %v665_v41 }
  0xcd   :  { %vm679_vm0 = vcmp.ge.f32.partialorder %v678_v42, 0.0  ;;  %v680_v43 = vmul.f32 0.2, %v678_v42 }
  0xce   :  { %v653_v44 = vpop.f32.mrf.mxu2 }
  0xcf   :  { %v666_v45 = vpop.f32.mrf.mxu3  ;;  %v681_v46 = vsel %vm679_vm0, %v678_v42, %v680_v43 }
  0xd0   :  { %v682_v47 = vpack.c.bf16 %v681_v46, %v681_v46 }
  0xd2   :  { %683 = vst [vmem:[%s1242_s3] sm:$0xf] %v682_v47 }

// kernel: fwd.7
= control target key start
LH: loop header
LB: loop body
LE: loop exit
PB: predicated region body
PF: predicated region fallthrough
CT: control target
= control target key end

     0   :  { %vm1330_vm1 = vcmask 99328   ;;  %s2446_s1 = inlined_call_operand.vmem [shape: bf16[2048,128], index: 1, kind: input, shape index: {}]   ;;  %s2447_s0 = inlined_call_operand.vmem [shape: bf16[2,2048], index: 0, kind: input, shape index: {}]   ;;  %s2448_s2 = inlined_call_operand.vmem [shape: f32[1,128], index: 2, kind: input, shape index: {}]   ;;  %s2449_s3 = inlined_call_operand.vmem [shape: f32[128,13], index: 3, kind: input, shape index: {}]   ;;  %s2450_s4 = inlined_call_operand.vmem [shape: f32[2,13], index: 4, kind: output, shape index: {}]  }
   0x1   :  { %v1855_v0 = vld [vmem:[%s2446_s1 + $0x38] sm:$0xff]  ;;  %v1854_v4 = vld [vmem:[%s2446_s1 + $0x30] sm:$0xff]  ;;  %v1853_v8 = vld [vmem:[%s2446_s1 + $0x28] sm:$0xff] }
   0x2   :  { %v1863_v1 = vld [vmem:[%s2446_s1 + $0x78] sm:$0xff]  ;;  %1083 = vmatpush.bf16.msra.mxu0 %v1855_v0  ;;  %v1862_v5 = vld [vmem:[%s2446_s1 + $0x70] sm:$0xff]  ;;  %v1861_v9 = vld [vmem:[%s2446_s1 + $0x68] sm:$0xff] }
   0x3   :  { %v1871_v2 = vld [vmem:[%s2446_s1 + $0xb8] sm:$0xff]  ;;  %1096 = vmatpush.bf16.msra.mxu1 %v1863_v1  ;;  %v1870_v6 = vld [vmem:[%s2446_s1 + $0xb0] sm:$0xff]  ;;  %v1869_v10 = vld [vmem:[%s2446_s1 + $0xa8] sm:$0xff] }
   0x4   :  { %v1879_v3 = vld [vmem:[%s2446_s1 + $0xf8] sm:$0xff]  ;;  %1109 = vmatpush.bf16.msra.mxu2 %v1871_v2  ;;  %v1878_v7 = vld [vmem:[%s2446_s1 + $0xf0] sm:$0xff]  ;;  %v1877_v11 = vld [vmem:[%s2446_s1 + $0xe8] sm:$0xff] }
   0x5   :  { %1122 = vmatpush.bf16.msra.mxu3 %v1879_v3  ;;  %v1852_v12 = vld [vmem:[%s2446_s1 + $0x20] sm:$0xff]  ;;  %v1851_v16 = vld [vmem:[%s2446_s1 + $0x18] sm:$0xff]  ;;  %v1850_v21 = vld [vmem:[%s2446_s1 + $0x10] sm:$0xff] }
   0x6   :  { %1084 = vmatpush.bf16.msra.mxu0 %v1854_v4  ;;  %v1860_v13 = vld [vmem:[%s2446_s1 + $0x60] sm:$0xff]  ;;  %v1859_v17 = vld [vmem:[%s2446_s1 + $0x58] sm:$0xff]  ;;  %v1858_v22 = vld [vmem:[%s2446_s1 + $0x50] sm:$0xff] }
   0x7   :  { %1097 = vmatpush.bf16.msra.mxu1 %v1862_v5  ;;  %v1868_v14 = vld [vmem:[%s2446_s1 + $0xa0] sm:$0xff]  ;;  %v1867_v18 = vld [vmem:[%s2446_s1 + $0x98] sm:$0xff]  ;;  %v1866_v23 = vld [vmem:[%s2446_s1 + $0x90] sm:$0xff] }
   0x8   :  { %1110 = vmatpush.bf16.msra.mxu2 %v1870_v6  ;;  %v1876_v15 = vld [vmem:[%s2446_s1 + $0xe0] sm:$0xff]  ;;  %v1875_v19 = vld [vmem:[%s2446_s1 + $0xd8] sm:$0xff]  ;;  %v1874_v24 = vld [vmem:[%s2446_s1 + $0xd0] sm:$0xff] }
   0x9   :  { %1123 = vmatpush.bf16.msra.mxu3 %v1878_v7  ;;  %v17_v20 = vld [vmem:[%s2447_s0] sm:$0xff]  ;;  %v1849_v25 = vld [vmem:[%s2446_s1 + $0x8] sm:$0xff]  ;;  %v1887_v33 = vld [vmem:[%s2446_s1 + $0x138] sm:$0xff] }
   0xa   :  { %1085 = vmatpush.bf16.msra.mxu0 %v1853_v8  ;;  %280 = vst [vmem:[#allocation1] ss:$9 sm:$0xff] %v17_v20  ;;  %v1857_v26 = vld [vmem:[%s2446_s1 + $0x48] sm:$0xff]  ;;  %v1848_v29 = vld [vmem:[%s2446_s1] sm:$0xff]  ;;  %v1895_v34 = vld [vmem:[%s2446_s1 + $0x178] sm:$0xff] }
   0xb   :  { %1098 = vmatpush.bf16.msra.mxu1 %v1861_v9  ;;  %v1865_v27 = vld [vmem:[%s2446_s1 + $0x88] sm:$0xff]  ;;  %v1856_v30 = vld [vmem:[%s2446_s1 + $0x40] sm:$0xff]  ;;  %v1903_v35 = vld [vmem:[%s2446_s1 + $0x1b8] sm:$0xff] }
   0xc   :  { %1111 = vmatpush.bf16.msra.mxu2 %v1869_v10  ;;  %v1873_v28 = vld [vmem:[%s2446_s1 + $0xc8] sm:$0xff]  ;;  %v1864_v31 = vld [vmem:[%s2446_s1 + $0x80] sm:$0xff]  ;;  %v1911_v36 = vld [vmem:[%s2446_s1 + $0x1f8] sm:$0xff] }
   0xd   :  { %1124 = vmatpush.bf16.msra.mxu3 %v1877_v11  ;;  %v1872_v32 = vld [vmem:[%s2446_s1 + $0xc0] sm:$0xff]  ;;  %v1886_v37 = vld [vmem:[%s2446_s1 + $0x130] sm:$0xff]  ;;  %v1885_v45 = vld [vmem:[%s2446_s1 + $0x128] sm:$0xff] }
   0xe   :  { %1086 = vmatpush.bf16.msra.mxu0 %v1852_v12  ;;  %v1894_v40 = vld [vmem:[%s2446_s1 + $0x170] sm:$0xff]  ;;  %v1893_v46 = vld [vmem:[%s2446_s1 + $0x168] sm:$0xff]  ;;  %v1884_v54 = vld [vmem:[%s2446_s1 + $0x120] sm:$0xff] }
   0xf   :  { %1099 = vmatpush.bf16.msra.mxu1 %v1860_v13  ;;  %v1902_v43 = vld [vmem:[%s2446_s1 + $0x1b0] sm:$0xff]  ;;  %v1901_v47 = vld [vmem:[%s2446_s1 + $0x1a8] sm:$0xff]  ;;  %v1892_v55 = vld [vmem:[%s2446_s1 + $0x160] sm:$0xff] }
  0x10   :  { %1112 = vmatpush.bf16.msra.mxu2 %v1868_v14  ;;  %v1910_v44 = vld [vmem:[%s2446_s1 + $0x1f0] sm:$0xff]  ;;  %v1909_v48 = vld [vmem:[%s2446_s1 + $0x1e8] sm:$0xff]  ;;  %v1900_v56 = vld [vmem:[%s2446_s1 + $0x1a0] sm:$0xff] }
  0x11   :  { %1125 = vmatpush.bf16.msra.mxu3 %v1876_v15  ;;  %v283_v38 = vld [vmem:[#allocation1 + $0x12] sm:$0xff]  ;;  %v281_v39 = vld [vmem:[#allocation1] sm:$0xff]  ;;  %v282_v42 = vld [vmem:[#allocation1 + $0x9] sm:$0xff] }
  0x12   :  { %1087 = vmatpush.bf16.msra.mxu0 %v1851_v16  ;;  %v284_v41 = vld [vmem:[#allocation1 + $0x1b] sm:$0xff]  ;;  %v18_v49 = vld [vmem:[%s2447_s0 + $0x8] sm:$0xff]  ;;  %v1882_v62 = vld [vmem:[%s2446_s1 + $0x110] sm:$0xff] }
  0x13   :  { %1100 = vmatpush.bf16.msra.mxu1 %v1859_v17  ;;  %v287_v50 = vld [vmem:[#allocation1 + $0x36] sm:$0xff]  ;;  %v285_v51 = vld [vmem:[#allocation1 + $0x24] sm:$0xff]  ;;  %v286_v53 = vld [vmem:[#allocation1 + $0x2d] sm:$0xff] }
  0x14   :  { %1113 = vmatpush.bf16.msra.mxu2 %v1867_v18  ;;  %v288_v52 = vld [vmem:[#allocation1 + $0x3f] sm:$0xff]  ;;  %v1890_v63 = vld [vmem:[%s2446_s1 + $0x150] sm:$0xff]  ;;  %v1881_v2 = vld [vmem:[%s2446_s1 + $0x108] sm:$0xff] }
  0x15   :  { %1126 = vmatpush.bf16.msra.mxu3 %v1875_v19  ;;  %290 = vst [vmem:[#allocation1] ss:$9 sm:$0xff] %v18_v49  ;;  %v1908_v57 = vld [vmem:[%s2446_s1 + $0x1e0] sm:$0xff]  ;;  %v1883_v58 = vld [vmem:[%s2446_s1 + $0x118] sm:$0xff]  ;;  %v1898_v0 = vld [vmem:[%s2446_s1 + $0x190] sm:$0xff] }
  0x16   :  { %1088 = vmatpush.bf16.msra.mxu0 %v1850_v21  ;;  %v1891_v59 = vld [vmem:[%s2446_s1 + $0x158] sm:$0xff]  ;;  %v1906_v1 = vld [vmem:[%s2446_s1 + $0x1d0] sm:$0xff]  ;;  %v1889_v3 = vld [vmem:[%s2446_s1 + $0x148] sm:$0xff] }
  0x17   :  { %1101 = vmatpush.bf16.msra.mxu1 %v1858_v22  ;;  %v1899_v60 = vld [vmem:[%s2446_s1 + $0x198] sm:$0xff]  ;;  %v1897_v4 = vld [vmem:[%s2446_s1 + $0x188] sm:$0xff]  ;;  %v1880_v6 = vld [vmem:[%s2446_s1 + $0x100] sm:$0xff] }
  0x18   :  { %1114 = vmatpush.bf16.msra.mxu2 %v1866_v23  ;;  %v1907_v61 = vld [vmem:[%s2446_s1 + $0x1d8] sm:$0xff]  ;;  %v1905_v5 = vld [vmem:[%s2446_s1 + $0x1c8] sm:$0xff]  ;;  %v1888_v7 = vld [vmem:[%s2446_s1 + $0x140] sm:$0xff] }
  0x19   :  { %1127 = vmatpush.bf16.msra.mxu3 %v1874_v24  ;;  %v1896_v8 = vld [vmem:[%s2446_s1 + $0x180] sm:$0xff]  ;;  %v1919_v10 = vld [vmem:[%s2446_s1 + $0x238] sm:$0xff]  ;;  %v1918_v14 = vld [vmem:[%s2446_s1 + $0x230] sm:$0xff] }
  0x1a   :  { %1089 = vmatpush.bf16.msra.mxu0 %v1849_v25  ;;  %v1904_v9 = vld [vmem:[%s2446_s1 + $0x1c0] sm:$0xff]  ;;  %v1927_v11 = vld [vmem:[%s2446_s1 + $0x278] sm:$0xff]  ;;  %v1926_v15 = vld [vmem:[%s2446_s1 + $0x270] sm:$0xff] }
  0x1b   :  { %1102 = vmatpush.bf16.msra.mxu1 %v1857_v26  ;;  %v1935_v12 = vld [vmem:[%s2446_s1 + $0x2b8] sm:$0xff]  ;;  %v1934_v16 = vld [vmem:[%s2446_s1 + $0x2b0] sm:$0xff]  ;;  %v1917_v18 = vld [vmem:[%s2446_s1 + $0x228] sm:$0xff] }
  0x1c   :  { %1115 = vmatpush.bf16.msra.mxu2 %v1865_v27  ;;  %v1943_v13 = vld [vmem:[%s2446_s1 + $0x2f8] sm:$0xff]  ;;  %v1942_v17 = vld [vmem:[%s2446_s1 + $0x2f0] sm:$0xff]  ;;  %v1925_v19 = vld [vmem:[%s2446_s1 + $0x268] sm:$0xff] }
  0x1d   :  { %1128 = vmatpush.bf16.msra.mxu3 %v1873_v28  ;;  %v1933_v20 = vld [vmem:[%s2446_s1 + $0x2a8] sm:$0xff]  ;;  %v1916_v22 = vld [vmem:[%s2446_s1 + $0x220] sm:$0xff]  ;;  %v1915_v26 = vld [vmem:[%s2446_s1 + $0x218] sm:$0xff] }
  0x1e   :  { %1090 = vmatpush.bf16.msra.mxu0 %v1848_v29  ;;  %v1941_v21 = vld [vmem:[%s2446_s1 + $0x2e8] sm:$0xff]  ;;  %v1924_v23 = vld [vmem:[%s2446_s1 + $0x260] sm:$0xff]  ;;  %v1923_v27 = vld [vmem:[%s2446_s1 + $0x258] sm:$0xff] }
  0x1f   :  { %1103 = vmatpush.bf16.msra.mxu1 %v1856_v30  ;;  %v1932_v24 = vld [vmem:[%s2446_s1 + $0x2a0] sm:$0xff]  ;;  %v1931_v28 = vld [vmem:[%s2446_s1 + $0x298] sm:$0xff]  ;;  %v1914_v30 = vld [vmem:[%s2446_s1 + $0x210] sm:$0xff] }
  0x20   :  { %1116 = vmatpush.bf16.msra.mxu2 %v1864_v31  ;;  %v1940_v25 = vld [vmem:[%s2446_s1 + $0x2e0] sm:$0xff]  ;;  %v1939_v29 = vld [vmem:[%s2446_s1 + $0x2d8] sm:$0xff]  ;;  %v1922_v31 = vld [vmem:[%s2446_s1 + $0x250] sm:$0xff] }
  0x21   :  { %1129 = vmatpush.bf16.msra.mxu3 %v1872_v32  ;;  %1091 = vmatmul.bf16.vlgmr.msra.gmra.mxu0 %v281_v39  ;;  %v1930_v32 = vld [vmem:[%s2446_s1 + $0x290] sm:$0xff]  ;;  %v1920_v39 = vld [vmem:[%s2446_s1 + $0x240] sm:$0xff] }
  0x22   :  { %1135 = vmatpush.bf16.msrb.mxu0 %v1887_v33  ;;  %1104 = vmatmul.bf16.vlgmr.msra.gmra.mxu1 %v282_v42  ;;  %v1938_v33 = vld [vmem:[%s2446_s1 + $0x2d0] sm:$0xff]  ;;  %v1951_v42 = vld [vmem:[%s2446_s1 + $0x338] sm:$0xff] }
  0x23   :  { %1148 = vmatpush.bf16.msrb.mxu1 %v1895_v34  ;;  %1117 = vmatmul.bf16.vlgmr.msra.gmra.mxu2 %v283_v38  ;;  %v1913_v34 = vld [vmem:[%s2446_s1 + $0x208] sm:$0xff]  ;;  %v1912_v38 = vld [vmem:[%s2446_s1 + $0x200] sm:$0xff] }
  0x24   :  { %1161 = vmatpush.bf16.msrb.mxu2 %v1903_v35  ;;  %1130 = vmatmul.bf16.vlgmr.msra.gmra.mxu3 %v284_v41  ;;  %v1921_v35 = vld [vmem:[%s2446_s1 + $0x248] sm:$0xff]  ;;  %v1936_v41 = vld [vmem:[%s2446_s1 + $0x2c0] sm:$0xff] }
  0x25   :  { %1174 = vmatpush.bf16.msrb.mxu3 %v1911_v36  ;;  %v1929_v36 = vld [vmem:[%s2446_s1 + $0x288] sm:$0xff]  ;;  %v294_v49 = vld [vmem:[#allocation1 + $0x1b] sm:$0xff] }
  0x26   :  { %1136 = vmatpush.bf16.msrb.mxu0 %v1886_v37  ;;  %v1937_v37 = vld [vmem:[%s2446_s1 + $0x2c8] sm:$0xff] }
  0x27   :  { %1149 = vmatpush.bf16.msrb.mxu1 %v1894_v40  ;;  %v1928_v40 = vld [vmem:[%s2446_s1 + $0x280] sm:$0xff] }
  0x28   :  { %1162 = vmatpush.bf16.msrb.mxu2 %v1902_v43  ;;  %v1959_v43 = vld [vmem:[%s2446_s1 + $0x378] sm:$0xff] }
  0x29   :  { %1175 = vmatpush.bf16.msrb.mxu3 %v1910_v44  ;;  %v1967_v44 = vld [vmem:[%s2446_s1 + $0x3b8] sm:$0xff] }
  0x2a   :  { %1137 = vmatpush.bf16.msrb.mxu0 %v1885_v45  ;;  %v1975_v45 = vld [vmem:[%s2446_s1 + $0x3f8] sm:$0xff] }
  0x2b   :  { %1150 = vmatpush.bf16.msrb.mxu1 %v1893_v46  ;;  %v291_v46 = vld [vmem:[#allocation1] sm:$0xff] }
  0x2c   :  { %1163 = vmatpush.bf16.msrb.mxu2 %v1901_v47  ;;  %v293_v47 = vld [vmem:[#allocation1 + $0x12] sm:$0xff] }
  0x2d   :  { %1176 = vmatpush.bf16.msrb.mxu3 %v1909_v48  ;;  %v292_v48 = vld [vmem:[#allocation1 + $0x9] sm:$0xff] }
  0x2e   :  { %1138 = vmatpush.bf16.msrb.mxu0 %v1884_v54  ;;  %v1949_v54 = vld [vmem:[%s2446_s1 + $0x328] sm:$0xff] }
  0x2f   :  { %1151 = vmatpush.bf16.msrb.mxu1 %v1892_v55  ;;  %v1957_v55 = vld [vmem:[%s2446_s1 + $0x368] sm:$0xff] }
  0x30   :  { %1164 = vmatpush.bf16.msrb.mxu2 %v1900_v56  ;;  %v1965_v56 = vld [vmem:[%s2446_s1 + $0x3a8] sm:$0xff] }
  0x31   :  { %1177 = vmatpush.bf16.msrb.mxu3 %v1908_v57  ;;  %v1973_v57 = vld [vmem:[%s2446_s1 + $0x3e8] sm:$0xff] }
  0x32   :  { %1139 = vmatpush.bf16.msrb.mxu0 %v1883_v58  ;;  %v1948_v58 = vld [vmem:[%s2446_s1 + $0x320] sm:$0xff] }
  0x33   :  { %1152 = vmatpush.bf16.msrb.mxu1 %v1891_v59  ;;  %v1956_v59 = vld [vmem:[%s2446_s1 + $0x360] sm:$0xff] }
  0x34   :  { %1165 = vmatpush.bf16.msrb.mxu2 %v1899_v60  ;;  %v1964_v60 = vld [vmem:[%s2446_s1 + $0x3a0] sm:$0xff] }
  0x35   :  { %1178 = vmatpush.bf16.msrb.mxu3 %v1907_v61  ;;  %v1972_v61 = vld [vmem:[%s2446_s1 + $0x3e0] sm:$0xff] }
  0x36   :  { %1140 = vmatpush.bf16.msrb.mxu0 %v1882_v62  ;;  %v1947_v62 = vld [vmem:[%s2446_s1 + $0x318] sm:$0xff] }
  0x37   :  { %1153 = vmatpush.bf16.msrb.mxu1 %v1890_v63  ;;  %v1955_v63 = vld [vmem:[%s2446_s1 + $0x358] sm:$0xff] }
  0x38   :  { %1166 = vmatpush.bf16.msrb.mxu2 %v1898_v0  ;;  %v1963_v0 = vld [vmem:[%s2446_s1 + $0x398] sm:$0xff] }
  0x39   :  { %1179 = vmatpush.bf16.msrb.mxu3 %v1906_v1  ;;  %v1971_v1 = vld [vmem:[%s2446_s1 + $0x3d8] sm:$0xff] }
  0x3a   :  { %1141 = vmatpush.bf16.msrb.mxu0 %v1881_v2  ;;  %v1946_v2 = vld [vmem:[%s2446_s1 + $0x310] sm:$0xff] }
  0x3b   :  { %1154 = vmatpush.bf16.msrb.mxu1 %v1889_v3  ;;  %v1954_v3 = vld [vmem:[%s2446_s1 + $0x350] sm:$0xff] }
  0x3c   :  { %1167 = vmatpush.bf16.msrb.mxu2 %v1897_v4  ;;  %v1962_v4 = vld [vmem:[%s2446_s1 + $0x390] sm:$0xff] }
  0x3d   :  { %1180 = vmatpush.bf16.msrb.mxu3 %v1905_v5  ;;  %v1970_v5 = vld [vmem:[%s2446_s1 + $0x3d0] sm:$0xff] }
  0x3e   :  { %1142 = vmatpush.bf16.msrb.mxu0 %v1880_v6  ;;  %v1945_v6 = vld [vmem:[%s2446_s1 + $0x308] sm:$0xff] }
  0x3f   :  { %1155 = vmatpush.bf16.msrb.mxu1 %v1888_v7  ;;  %v1953_v7 = vld [vmem:[%s2446_s1 + $0x348] sm:$0xff] }
  0x40   :  { %1168 = vmatpush.bf16.msrb.mxu2 %v1896_v8  ;;  %v1961_v8 = vld [vmem:[%s2446_s1 + $0x388] sm:$0xff] }
  0x41   :  { %1181 = vmatpush.bf16.msrb.mxu3 %v1904_v9  ;;  %1143 = vmatmul.bf16.vlgmr.msrb.gmra.mxu0 %v285_v51  ;;  %v1958_v51 = vld [vmem:[%s2446_s1 + $0x370] sm:$0xff]  ;;  %v1969_v9 = vld [vmem:[%s2446_s1 + $0x3c8] sm:$0xff] }
  0x42   :  { %1187 = vmatpush.bf16.msra.mxu0 %v1919_v10  ;;  %1156 = vmatmul.bf16.vlgmr.msrb.gmra.mxu1 %v286_v53  ;;  %v1974_v53 = vld [vmem:[%s2446_s1 + $0x3f0] sm:$0xff]  ;;  %v1944_v10 = vld [vmem:[%s2446_s1 + $0x300] sm:$0xff] }
  0x43   :  { %1200 = vmatpush.bf16.msra.mxu1 %v1927_v11  ;;  %1169 = vmatmul.bf16.vlgmr.msrb.gmra.mxu2 %v287_v50  ;;  %v1950_v50 = vld [vmem:[%s2446_s1 + $0x330] sm:$0xff]  ;;  %v1952_v11 = vld [vmem:[%s2446_s1 + $0x340] sm:$0xff] }
  0x44   :  { %1213 = vmatpush.bf16.msra.mxu2 %v1935_v12  ;;  %1182 = vmatmul.bf16.vlgmr.msrb.gmra.mxu3 %v288_v52  ;;  %v1966_v52 = vld [vmem:[%s2446_s1 + $0x3b0] sm:$0xff]  ;;  %v1960_v12 = vld [vmem:[%s2446_s1 + $0x380] sm:$0xff] }
  0x45   :  { %1226 = vmatpush.bf16.msra.mxu3 %v1943_v13  ;;  %v1968_v13 = vld [vmem:[%s2446_s1 + $0x3c0] sm:$0xff] }
  0x46   :  { %1188 = vmatpush.bf16.msra.mxu0 %v1918_v14  ;;  %v295_v14 = vld [vmem:[#allocation1 + $0x24] sm:$0xff] }
  0x47   :  { %1201 = vmatpush.bf16.msra.mxu1 %v1926_v15  ;;  %v296_v15 = vld [vmem:[#allocation1 + $0x2d] sm:$0xff] }
  0x48   :  { %1214 = vmatpush.bf16.msra.mxu2 %v1934_v16  ;;  %v297_v16 = vld [vmem:[#allocation1 + $0x36] sm:$0xff] }
  0x49   :  { %1227 = vmatpush.bf16.msra.mxu3 %v1942_v17  ;;  %v298_v17 = vld [vmem:[#allocation1 + $0x3f] sm:$0xff] }
  0x4a   :  { %1189 = vmatpush.bf16.msra.mxu0 %v1917_v18  ;;  %v1976_v18 = vld [vmem:[%s2448_s2] ss:$0 sm:$0xff] }
  0x4b   :  { %1202 = vmatpush.bf16.msra.mxu1 %v1925_v19 }
  0x4c   :  { %1215 = vmatpush.bf16.msra.mxu2 %v1933_v20 }
  0x4d   :  { %1228 = vmatpush.bf16.msra.mxu3 %v1941_v21 }
  0x4e   :  { %1190 = vmatpush.bf16.msra.mxu0 %v1916_v22 }
  0x4f   :  { %1203 = vmatpush.bf16.msra.mxu1 %v1924_v23 }
  0x50   :  { %1216 = vmatpush.bf16.msra.mxu2 %v1932_v24 }
  0x51   :  { %1229 = vmatpush.bf16.msra.mxu3 %v1940_v25 }
  0x52   :  { %1191 = vmatpush.bf16.msra.mxu0 %v1915_v26 }
  0x53   :  { %1204 = vmatpush.bf16.msra.mxu1 %v1923_v27 }
  0x54   :  { %1217 = vmatpush.bf16.msra.mxu2 %v1931_v28 }
  0x55   :  { %1230 = vmatpush.bf16.msra.mxu3 %v1939_v29 }
  0x56   :  { %1192 = vmatpush.bf16.msra.mxu0 %v1914_v30 }
  0x57   :  { %1205 = vmatpush.bf16.msra.mxu1 %v1922_v31 }
  0x58   :  { %1218 = vmatpush.bf16.msra.mxu2 %v1930_v32 }
  0x59   :  { %1231 = vmatpush.bf16.msra.mxu3 %v1938_v33 }
  0x5a   :  { %1193 = vmatpush.bf16.msra.mxu0 %v1913_v34 }
  0x5b   :  { %1206 = vmatpush.bf16.msra.mxu1 %v1921_v35  ;;  %v1309_v35 = vld [vmem:[%s2449_s3 + $0x78] sm:$0xff] }
  0x5c   :  { %1219 = vmatpush.bf16.msra.mxu2 %v1929_v36  ;;  %v1308_v36 = vld [vmem:[%s2449_s3 + $0x70] sm:$0xff] }
  0x5d   :  { %1232 = vmatpush.bf16.msra.mxu3 %v1937_v37 }
  0x5e   :  { %1194 = vmatpush.bf16.msra.mxu0 %v1912_v38 }
  0x5f   :  { %1207 = vmatpush.bf16.msra.mxu1 %v1920_v39  ;;  %v1307_v39 = vld [vmem:[%s2449_s3 + $0x68] sm:$0xff] }
  0x60   :  { %1220 = vmatpush.bf16.msra.mxu2 %v1928_v40  ;;  %v1306_v40 = vld [vmem:[%s2449_s3 + $0x60] sm:$0xff] }
  0x61   :  { %1233 = vmatpush.bf16.msra.mxu3 %v1936_v41  ;;  %1195 = vmatmul.bf16.vlgmr.msra.gmra.mxu0 %v291_v46  ;;  %v1305_v41 = vld [vmem:[%s2449_s3 + $0x58] sm:$0xff]  ;;  %v1302_v46 = vld [vmem:[%s2449_s3 + $0x40] sm:$0xff] }
  0x62   :  { %1239 = vmatpush.bf16.msrb.mxu0 %v1951_v42  ;;  %1208 = vmatmul.bf16.vlgmr.msra.gmra.mxu1 %v292_v48  ;;  %v1300_v48 = vld [vmem:[%s2449_s3 + $0x30] sm:$0xff] }
  0x63   :  { %1252 = vmatpush.bf16.msrb.mxu1 %v1959_v43  ;;  %1221 = vmatmul.bf16.vlgmr.msra.gmra.mxu2 %v293_v47  ;;  %v1301_v47 = vld [vmem:[%s2449_s3 + $0x38] sm:$0xff] }
  0x64   :  { %1265 = vmatpush.bf16.msrb.mxu2 %v1967_v44  ;;  %1234 = vmatmul.bf16.vlgmr.msra.gmra.mxu3 %v294_v49  ;;  %v1304_v44 = vld [vmem:[%s2449_s3 + $0x50] sm:$0xff] }
  0x65   :  { %1278 = vmatpush.bf16.msrb.mxu3 %v1975_v45  ;;  %v1303_v45 = vld [vmem:[%s2449_s3 + $0x48] sm:$0xff] }
  0x66   :  { %1240 = vmatpush.bf16.msrb.mxu0 %v1950_v50  ;;  %v1299_v50 = vld [vmem:[%s2449_s3 + $0x28] sm:$0xff] }
  0x67   :  { %1253 = vmatpush.bf16.msrb.mxu1 %v1958_v51  ;;  %v1298_v51 = vld [vmem:[%s2449_s3 + $0x20] sm:$0xff] }
  0x68   :  { %1266 = vmatpush.bf16.msrb.mxu2 %v1966_v52 }
  0x69   :  { %1279 = vmatpush.bf16.msrb.mxu3 %v1974_v53  ;;  %v1297_v53 = vld [vmem:[%s2449_s3 + $0x18] sm:$0xff] }
  0x6a   :  { %1241 = vmatpush.bf16.msrb.mxu0 %v1949_v54 }
  0x6b   :  { %1254 = vmatpush.bf16.msrb.mxu1 %v1957_v55 }
  0x6c   :  { %1267 = vmatpush.bf16.msrb.mxu2 %v1965_v56  ;;  %v1296_v56 = vld [vmem:[%s2449_s3 + $0x10] sm:$0xff] }
  0x6d   :  { %1280 = vmatpush.bf16.msrb.mxu3 %v1973_v57 }
  0x6e   :  { %1242 = vmatpush.bf16.msrb.mxu0 %v1948_v58 }
  0x6f   :  { %1255 = vmatpush.bf16.msrb.mxu1 %v1956_v59  ;;  %v1295_v59 = vld [vmem:[%s2449_s3 + $0x8] sm:$0xff] }
  0x70   :  { %1268 = vmatpush.bf16.msrb.mxu2 %v1964_v60 }
  0x71   :  { %1281 = vmatpush.bf16.msrb.mxu3 %v1972_v61 }
  0x72   :  { %1243 = vmatpush.bf16.msrb.mxu0 %v1947_v62  ;;  %v1294_v62 = vld [vmem:[%s2449_s3] sm:$0xff] }
  0x73   :  { %1256 = vmatpush.bf16.msrb.mxu1 %v1955_v63 }
  0x74   :  { %1269 = vmatpush.bf16.msrb.mxu2 %v1963_v0 }
  0x75   :  { %1282 = vmatpush.bf16.msrb.mxu3 %v1971_v1 }
  0x76   :  { %1244 = vmatpush.bf16.msrb.mxu0 %v1946_v2 }
  0x77   :  { %1257 = vmatpush.bf16.msrb.mxu1 %v1954_v3 }
  0x78   :  { %1270 = vmatpush.bf16.msrb.mxu2 %v1962_v4 }
  0x79   :  { %1283 = vmatpush.bf16.msrb.mxu3 %v1970_v5 }
  0x7a   :  { %1245 = vmatpush.bf16.msrb.mxu0 %v1945_v6 }
  0x7b   :  { %1258 = vmatpush.bf16.msrb.mxu1 %v1953_v7 }
  0x7c   :  { %1271 = vmatpush.bf16.msrb.mxu2 %v1961_v8 }
  0x7d   :  { %1284 = vmatpush.bf16.msrb.mxu3 %v1969_v9 }
  0x7e   :  { %1246 = vmatpush.bf16.msrb.mxu0 %v1944_v10 }
  0x7f   :  { %1259 = vmatpush.bf16.msrb.mxu1 %v1952_v11 }
  0x80   :  { %1272 = vmatpush.bf16.msrb.mxu2 %v1960_v12 }
  0x81   :  { %1285 = vmatpush.bf16.msrb.mxu3 %v1968_v13  ;;  %1247 = vmatmul.bf16.vlgmr.msrb.gmra.mxu0 %v295_v14 }
  0x82   :  { %1260 = vmatmul.bf16.vlgmr.msrb.gmra.mxu1 %v296_v15  ;;  %1310 = vmatpush.msra.mxu0 %v1309_v35 }
  0x83   :  { %1273 = vmatmul.bf16.vlgmr.msrb.gmra.mxu2 %v297_v16 }
  0x84   :  { %1286 = vmatmul.bf16.vlgmr.msrb.gmra.mxu3 %v298_v17  ;;  %1311 = vmatpush.msra.mxu0 %v1308_v36 }
  0x86   :  { %1312 = vmatpush.msra.mxu0 %v1307_v39 }
  0x88   :  { %1313 = vmatpush.msra.mxu0 %v1306_v40 }
  0x8a   :  { %1314 = vmatpush.msra.mxu0 %v1305_v41 }
  0x8c   :  { %1315 = vmatpush.msra.mxu0 %v1304_v44 }
  0x8e   :  { %1316 = vmatpush.msra.mxu0 %v1303_v45 }
  0x90   :  { %1317 = vmatpush.msra.mxu0 %v1302_v46 }
  0x92   :  { %1318 = vmatpush.msra.mxu0 %v1301_v47 }
  0x94   :  { %1319 = vmatpush.msra.mxu0 %v1300_v48 }
  0x96   :  { %1320 = vmatpush.msra.mxu0 %v1299_v50 }
  0x98   :  { %1321 = vmatpush.msra.mxu0 %v1298_v51 }
  0x9a   :  { %1322 = vmatpush.msra.mxu0 %v1297_v53 }
  0x9c   :  { %1323 = vmatpush.msra.mxu0 %v1296_v56 }
  0x9e   :  { %v1092_v19 = vpop.f32.mrf.mxu0  ;;  %1324 = vmatpush.msra.mxu0 %v1295_v59 }
  0x9f   :  { %v1093_v20 = vadd.f32 %v1976_v18, %v1092_v19  ;;  %v1105_v21 = vpop.f32.mrf.mxu1 }
  0xa0   :  { %1325 = vmatpush.msra.mxu0 %v1294_v62 }
  0xa1   :  { %v1106_v22 = vadd.f32 %v1105_v21, %v1093_v20 }
  0xa6   :  { %v1118_v23 = vpop.f32.mrf.mxu2  ;;  %v1094_v26 = vpop.f32.mrf.mxu0 }
  0xa7   :  { %v1119_v24 = vadd.f32 %v1118_v23, %v1106_v22  ;;  %v1131_v25 = vpop.f32.mrf.mxu3  ;;  %v1107_v28 = vpop.f32.mrf.mxu1 }
  0xa9   :  { %v1132_v27 = vadd.f32 %v1131_v25, %v1119_v24 }
  0xae   :  { %v1120_v29 = vpop.f32.mrf.mxu2 }
  0xaf   :  { %v1133_v30 = vpop.f32.mrf.mxu3 }
  0xbe   :  { %v1144_v31 = vpop.f32.mrf.mxu0 }
  0xbf   :  { %v1157_v32 = vpop.f32.mrf.mxu1  ;;  %v1145_v54 = vadd.f32 %v1144_v31, %v1132_v27 }
  0xc1   :  { %v1158_v60 = vadd.f32 %v1157_v32, %v1145_v54 }
  0xc6   :  { %v1170_v33 = vpop.f32.mrf.mxu2  ;;  %v1146_v37 = vpop.f32.mrf.mxu0 }
  0xc7   :  { %v1183_v34 = vpop.f32.mrf.mxu3  ;;  %v1159_v38 = vpop.f32.mrf.mxu1  ;;  %v1171_v63 = vadd.f32 %v1170_v33, %v1158_v60 }
  0xc9   :  { %v1184_v2 = vadd.f32 %v1183_v34, %v1171_v63 }
  0xce   :  { %v1172_v42 = vpop.f32.mrf.mxu2 }
  0xcf   :  { %v1185_v43 = vpop.f32.mrf.mxu3 }
  0xde   :  { %v1196_v49 = vpop.f32.mrf.mxu0 }
  0xdf   :  { %v1209_v52 = vpop.f32.mrf.mxu1  ;;  %v1197_v3 = vadd.f32 %v1196_v49, %v1184_v2 }
  0xe1   :  { %v1210_v4 = vadd.f32 %v1209_v52, %v1197_v3 }
  0xe6   :  { %v1222_v55 = vpop.f32.mrf.mxu2  ;;  %v1198_v58 = vpop.f32.mrf.mxu0 }
  0xe7   :  { %v1235_v57 = vpop.f32.mrf.mxu3  ;;  %v1211_v61 = vpop.f32.mrf.mxu1  ;;  %v1223_v5 = vadd.f32 %v1222_v55, %v1210_v4 }
  0xe9   :  { %v1236_v6 = vadd.f32 %v1235_v57, %v1223_v5 }
  0xee   :  { %v1224_v0 = vpop.f32.mrf.mxu2 }
  0xef   :  { %v1237_v1 = vpop.f32.mrf.mxu3 }
  0xfe   :  { %v1248_v7 = vpop.f32.mrf.mxu0 }
  0xff   :  { %v1261_v8 = vpop.f32.mrf.mxu1  ;;  %v1249_v9 = vadd.f32 %v1248_v7, %v1236_v6 }
 0x101   :  { %v1262_v10 = vadd.f32 %v1261_v8, %v1249_v9 }
 0x106   :  { %v1274_v11 = vpop.f32.mrf.mxu2  ;;  %v1250_v14 = vpop.f32.mrf.mxu0 }
 0x107   :  { %v1287_v12 = vpop.f32.mrf.mxu3  ;;  %v1275_v13 = vadd.f32 %v1274_v11, %v1262_v10  ;;  %v1263_v15 = vpop.f32.mrf.mxu1 }
 0x109   :  { %v1288_v16 = vadd.f32 %v1287_v12, %v1275_v13 }
 0x10b   :  { %vm1291_vm0 = vcmp.ge.f32.partialorder %v1288_v16, 0.0  ;;  %v1292_v17 = vmul.f32 0.2, %v1288_v16 }
 0x10d   :  { %v1293_v18 = vsel %vm1291_vm0, %v1288_v16, %v1292_v17 }
 0x10e   :  { %v1276_v19 = vpop.f32.mrf.mxu2  ;;  %1326 = vmatmul.f32.vlgmr.msra.gmra.mxu0 %v1293_v18 }
 0x10f   :  { %v1289_v20 = vpop.f32.mrf.mxu3 }
 0x18b   :  { %v1327_v21 = vpop.f32.mrf.mxu0 }
 0x18c   :  { %1331 = vst.msk [vmem:[%s2450_s4] sm:$0x3] %vm1330_vm1, %v1327_v21 }

</bundles_post_ra>
